<compile_context>
chip_gen: v7x
topology: tpu7x:2x2x1
jax: 0.10.0
libtpu: 0.0.40
codegen_flags: <defaults>
</compile_context>

<pallas_src>
import functools

import jax
import jax.numpy as jnp
from jax import lax
from jax.experimental import pallas as pl
from jax.experimental.pallas import tpu as pltpu


# ---------------------------------------------------------------------------
# Fused Pallas kernel: grid = (batch_tiles, depth).  One batch tile stays
# resident in a padded VMEM scratch across all depth (residual-block) steps.
# ---------------------------------------------------------------------------
def _rrec_kernel(x_ref, dww_ref, vec_ref, pww_ref, o_ref, xpad_ref,
                 *, H, W, C, k, pad, depth, bt, lpad, wpad):
    d = pl.program_id(1)
    Hp = H + 2 * pad

    # Depth step 0: zero ONLY the halo region (it stays zero afterwards since
    # the per-step carry writes the interior only) and load this batch tile's
    # activation into the sublane-aligned interior.
    @pl.when(d == 0)
    def _():
        if lpad > 0:
            xpad_ref[:, :, 0:lpad, :] = jnp.zeros((bt, Hp, lpad, C), jnp.float32)
        if wpad > lpad + W:
            xpad_ref[:, :, lpad + W:wpad, :] = jnp.zeros(
                (bt, Hp, wpad - lpad - W, C), jnp.float32)
        if pad > 0:
            xpad_ref[:, 0:pad, lpad:lpad + W, :] = jnp.zeros(
                (bt, pad, W, C), jnp.float32)
            xpad_ref[:, pad + H:Hp, lpad:lpad + W, :] = jnp.zeros(
                (bt, pad, W, C), jnp.float32)
        xpad_ref[:, pad:pad + H, lpad:lpad + W, :] = x_ref[...].astype(jnp.float32)

    # Per-depth weights: VMEM-resident full-depth blocks, selected by d.
    w_taps = dww_ref[d]                       # (k*k, C) f32
    vecs = vec_ref[d]                         # (4, C):  dw_b, pw_b', s2, b2
    dw_b = vecs[0:1]
    pw_b = vecs[1:2]
    s2 = vecs[2:3]
    b2 = vecs[3:4]

    # Depthwise k x k conv as k*k shifted multiply-accumulates on the VPU.
    # dx-shifted (sublane-axis) views are hoisted out of the dy loop; dy
    # shifts slice the untiled H axis (free).
    # TODO(synk): on v6e/v7x a pltpu.roll along W (halo zeros make wraparound
    # safe) would move the shift work onto the idle XLU slot.
    acc = jnp.zeros((bt, H, W, C), jnp.float32)
    for dx in range(k):
        start = lpad - pad + dx
        xs = xpad_ref[:, :, start:start + W, :]            # (bt, Hp, W, C)
        for dy in range(k):
            idx = dy * k + dx
            acc = acc + xs[:, dy:dy + H] * w_taps[idx:idx + 1]
    acc = acc + dw_b

    # GELU (tanh approximation -> EUP slot).  BN1 is folded into the 1x1
    # conv weights/bias, so there is no per-element scale/shift here.
    y = jax.nn.gelu(acc, approximate=True)

    # 1x1 conv == (bt*H*W, C) x (C, C) MXU matmul; bf16 operands, f32 acc.
    rows = bt * H * W
    y2 = jnp.dot(y.reshape(rows, C).astype(jnp.bfloat16), pww_ref[d],
                 preferred_element_type=jnp.float32)
    y2 = y2 + pw_b
    y2 = jax.nn.gelu(y2, approximate=True)
    y2 = y2 * s2 + b2

    # Residual add: re-read the previous activation from the scratch here
    # (deferred, aligned vld) instead of holding it live across the matmul.
    resid = xpad_ref[:, pad:pad + H, lpad:lpad + W, :]
    out = y2.reshape(bt, H, W, C) + resid

    # Carry for the next residual block (sublane-aligned, unmasked store).
    xpad_ref[:, pad:pad + H, lpad:lpad + W, :] = out

    # Write back to HBM only after the last block.
    @pl.when(d == depth - 1)
    def _():
        o_ref[...] = out.astype(o_ref.dtype)


def _round_up(x, m):
    return -(-x // m) * m


def _pick_batch_tile(N, H, W, target_rows=512):
    # Target ~256-512 MXU rows per matmul (v6e/v7x MXUs are 256-wide; 128
    # already fills v5e), but prefer >= 2 batch tiles so the "parallel" grid
    # axis can shard across v7x's two TensorCores.
    best_multi = None
    best_any = 1
    for bt in range(1, N + 1):
        if N % bt:
            continue
        if bt * H * W <= target_rows:
            best_any = bt
            if N // bt >= 2:
                best_multi = bt
    return best_multi if best_multi is not None else best_any


def rrec_forward(x, params, k, vmem_budget=48 * 1024 * 1024):
    """x: (N, H, W, C) float32; params: dict of depth-stacked arrays."""
    N, H, W, C = x.shape
    depth, kk, _ = params["dw_w"].shape
    assert kk == k * k and k % 2 == 1, "module uses odd kernel sizes"
    pad = k // 2
    Hp = H + 2 * pad
    lpad = _round_up(pad, 8) if pad > 0 else 0         # sublane-aligned interior
    Wpad = max(8, _round_up(lpad + W + pad, 8))

    bt = _pick_batch_tile(N, H, W)

    # Keep double-buffered in/out blocks + carried scratch + resident weights
    # within a conservative VMEM budget (v7x: 64 MiB/TC physical).
    def vmem_estimate(bt_):
        blk = bt_ * H * W * C * 4
        scratch = bt_ * Hp * Wpad * C * 4
        weights = depth * (kk * C * 4 + 4 * C * 4 + C * C * 2)
        return 4 * blk + scratch + 2 * weights

    while bt > 1 and vmem_estimate(bt) > vmem_budget:
        bt = max(cand for cand in range(1, bt) if N % cand == 0)

    kernel = functools.partial(_rrec_kernel, H=H, W=W, C=C, k=k, pad=pad,
                               depth=depth, bt=bt, lpad=lpad, wpad=Wpad)

    def resident(shape):
        # Full-depth block with a constant index_map: DMA'd once, stays in
        # VMEM for the whole kernel; the kernel indexes it with program_id(1).
        return pl.BlockSpec((depth,) + shape,
                            lambda n, d: (0,) + (0,) * len(shape))

    return pl.pallas_call(
        kernel,
        out_shape=jax.ShapeDtypeStruct((N, H, W, C), x.dtype),
        grid_spec=pltpu.PrefetchScalarGridSpec(
            num_scalar_prefetch=0,
            grid=(N // bt, depth),
            in_specs=[
                # x: index ignores depth -> DMA'd once per batch tile.
                pl.BlockSpec((bt, H, W, C), lambda n, d: (n, 0, 0, 0)),
                resident((kk, C)),     # depthwise taps (f32)
                resident((4, C)),      # packed vectors: dw_b, pw_b', s2, b2
                resident((C, C)),      # BN1-folded 1x1 weight (bf16)
            ],
            out_specs=pl.BlockSpec((bt, H, W, C), lambda n, d: (n, 0, 0, 0)),
            scratch_shapes=[pltpu.VMEM((bt, Hp, Wpad, C), jnp.float32)],
        ),
        compiler_params=pltpu.CompilerParams(
            dimension_semantics=("parallel", "arbitrary"),
            vmem_limit_bytes=64 * 1024 * 1024),
    )(x, params["dw_w"], params["vecs"], params["pw_w"])


# ---------------------------------------------------------------------------
# Deterministic parameter construction (+ BN folding; BN1 folded into 1x1).
# ---------------------------------------------------------------------------
def make_params(key, depth, C, k, eps=1e-5):
    raws, dw_list, vec_list, pw_list = [], [], [], []
    for kb in jax.random.split(key, depth):
        ks = jax.random.split(kb, 10)
        raw = dict(
            dw_w=jax.random.normal(ks[0], (k, k, C), jnp.float32) * 0.05,
            dw_b=jax.random.normal(ks[1], (C,), jnp.float32) * 0.05,
            g1=1.0 + 0.1 * jax.random.normal(ks[2], (C,), jnp.float32),
            be1=0.05 * jax.random.normal(ks[3], (C,), jnp.float32),
            m1=0.05 * jax.random.normal(ks[4], (C,), jnp.float32),
            v1=1.0 + 0.1 * jax.random.uniform(ks[5], (C,), jnp.float32),
            pw_w=jax.random.normal(ks[6], (C, C), jnp.float32) * 0.03,
            pw_b=jax.random.normal(ks[7], (C,), jnp.float32) * 0.05,
            g2=1.0 + 0.1 * jax.random.normal(ks[8], (C,), jnp.float32),
            be2=0.05 * jax.random.normal(ks[9], (C,), jnp.float32),
            m2=jnp.zeros((C,), jnp.float32),
            v2=jnp.ones((C,), jnp.float32),
        )
        s1 = raw["g1"] / jnp.sqrt(raw["v1"] + eps)
        b1 = raw["be1"] - raw["m1"] * s1
        s2 = raw["g2"] / jnp.sqrt(raw["v2"] + eps)
        b2 = raw["be2"] - raw["m2"] * s2
        # Fold BN1 into the 1x1 conv: (y*s1 + b1) @ W + b
        #   == y @ (diag(s1) @ W) + (b1 @ W + b)
        pw_fold = raw["pw_w"] * s1[:, None]
        pb_fold = b1 @ raw["pw_w"] + raw["pw_b"]
        raws.append(raw)
        dw_list.append(raw["dw_w"].reshape(k * k, C))
        vec_list.append(jnp.stack([raw["dw_b"], pb_fold, s2, b2]))    # (4, C)
        pw_list.append(pw_fold.astype(jnp.bfloat16))
    stacked = dict(
        dw_w=jnp.stack(dw_list),           # (depth, k*k, C)  f32
        vecs=jnp.stack(vec_list),          # (depth, 4, C)    f32
        pw_w=jnp.stack(pw_list),           # (depth, C, C)    bf16
    )
    return raws, stacked


# ---------------------------------------------------------------------------
# Pure-JAX reference (NHWC, exact erf GELU, unfolded BN) for correctness.
# ---------------------------------------------------------------------------
def ref_block(x, raw, k, eps=1e-5):
    C = x.shape[-1]
    rhs = raw["dw_w"][:, :, None, :]                       # (k, k, 1, C) HWIO
    y = lax.conv_general_dilated(
        x, rhs, window_strides=(1, 1), padding="SAME",
        dimension_numbers=("NHWC", "HWIO", "NHWC"),
        feature_group_count=C) + raw["dw_b"]
    y = jax.nn.gelu(y, approximate=False)
    y = (y - raw["m1"]) / jnp.sqrt(raw["v1"] + eps) * raw["g1"] + raw["be1"]
    y = jnp.einsum("nhwc,cd->nhwd", y, raw["pw_w"]) + raw["pw_b"]
    y = jax.nn.gelu(y, approximate=False)
    y = (y - raw["m2"]) / jnp.sqrt(raw["v2"] + eps) * raw["g2"] + raw["be2"]
    return y + x


if __name__ == "__main__":
    # Small shapes consistent with the module (dim scaled down, C lane-aligned).
    N, H, W, C = 2, 8, 8, 128
    DEPTH, K = 3, 3

    key = jax.random.PRNGKey(0)
    kx, kp = jax.random.split(key)
    x = jax.random.normal(kx, (N, H, W, C), jnp.float32)

    raws, stacked = make_params(kp, DEPTH, C, K)

    out = jax.block_until_ready(rrec_forward(x, stacked, K))

    # Reference check (exact erf GELU, f32 matmul, unfolded BN).
    ref = x
    for r in raws:
        ref = ref_block(ref, r, K)
    ref = jax.block_until_ready(ref)

    assert out.shape == (N, H, W, C)
    assert bool(jnp.all(jnp.isfinite(out)))
    # Tolerance loosened from 2e-3 -> 5e-3 to absorb bf16 matmul operands and
    # the tanh-GELU approximation vs. the exact-erf f32 reference.
    assert jnp.allclose(out, ref, rtol=5e-3, atol=5e-3), (
        float(jnp.max(jnp.abs(out - ref))))

    print("KERNEL_OK")
</pallas_src>

<mosaic_0001>
module attributes {stable_mosaic.version = 11 : i64} {
  func.func @_rrec_kernel(%arg0: i32, %arg1: i32, %arg2: memref<1x8x8x128xf32, #tpu.memory_space<vmem>>, %arg3: memref<3x9x128xf32, #tpu.memory_space<vmem>>, %arg4: memref<3x4x128xf32, #tpu.memory_space<vmem>>, %arg5: memref<3x128x128xbf16, #tpu.memory_space<vmem>>, %arg6: memref<1x8x8x128xf32, #tpu.memory_space<vmem>>, %arg7: memref<1x10x24x128xf32, #tpu.memory_space<vmem>>) attributes {dimension_semantics = [#tpu.dimension_semantics<parallel>, #tpu.dimension_semantics<arbitrary>], iteration_bounds = array<i64: 2, 3>, scalar_prefetch = 0 : i64, scratch_operands = 1 : i64, tpu.core_type = #tpu.core_type<tc>, window_params = [{transform_indices = @transform_0, window_bounds = array<i64: 1, 8, 8, 128>}, {pipeline_mode = #tpu.pipeline_mode<synchronous>, transform_indices = @transform_1, window_bounds = array<i64: 3, 9, 128>}, {pipeline_mode = #tpu.pipeline_mode<synchronous>, transform_indices = @transform_2, window_bounds = array<i64: 3, 4, 128>}, {pipeline_mode = #tpu.pipeline_mode<synchronous>, transform_indices = @transform_3, window_bounds = array<i64: 3, 128, 128>}, {transform_indices = @transform_4, window_bounds = array<i64: 1, 8, 8, 128>}]} {
    %c0_i32 = arith.constant 0 : i32
    %0 = arith.cmpi eq, %arg1, %c0_i32 : i32
    %1 = arith.extui %0 : i1 to i32
    %c0_i32_0 = arith.constant 0 : i32
    %2 = arith.cmpi ne, %1, %c0_i32_0 : i32
    scf.if %2 {
      %cst_32 = arith.constant 0.000000e+00 : f32
      %119 = vector.broadcast %cst_32 : f32 to vector<1x10x8x128xf32>
      %c0_33 = arith.constant 0 : index
      %c0_34 = arith.constant 0 : index
      %c0_35 = arith.constant 0 : index
      %c0_36 = arith.constant 0 : index
      %120 = vector.load %arg7[%c0_33, %c0_34, %c0_35, %c0_36] : memref<1x10x24x128xf32, #tpu.memory_space<vmem>>, vector<1x10x8x128xf32>
      tpu.vector_store %arg7[%c0_33, %c0_34, %c0_35, %c0_36], %119 {strides = array<i32>} : memref<1x10x24x128xf32, #tpu.memory_space<vmem>>, vector<1x10x8x128xf32>,
      %cst_37 = arith.constant 0.000000e+00 : f32
      %121 = vector.broadcast %cst_37 : f32 to vector<1x10x8x128xf32>
      %c0_38 = arith.constant 0 : index
      %c0_39 = arith.constant 0 : index
      %c16 = arith.constant 16 : index
      %c0_40 = arith.constant 0 : index
      %122 = vector.load %arg7[%c0_38, %c0_39, %c16, %c0_40] : memref<1x10x24x128xf32, #tpu.memory_space<vmem>>, vector<1x10x8x128xf32>
      tpu.vector_store %arg7[%c0_38, %c0_39, %c16, %c0_40], %121 {strides = array<i32>} : memref<1x10x24x128xf32, #tpu.memory_space<vmem>>, vector<1x10x8x128xf32>,
      %cst_41 = arith.constant 0.000000e+00 : f32
      %123 = vector.broadcast %cst_41 : f32 to vector<1x1x8x128xf32>
      %c0_42 = arith.constant 0 : index
      %c0_43 = arith.constant 0 : index
      %c8_44 = arith.constant 8 : index
      %c0_45 = arith.constant 0 : index
      %124 = vector.load %arg7[%c0_42, %c0_43, %c8_44, %c0_45] : memref<1x10x24x128xf32, #tpu.memory_space<vmem>>, vector<1x1x8x128xf32>
      tpu.vector_store %arg7[%c0_42, %c0_43, %c8_44, %c0_45], %123 {strides = array<i32>} : memref<1x10x24x128xf32, #tpu.memory_space<vmem>>, vector<1x1x8x128xf32>,
      %cst_46 = arith.constant 0.000000e+00 : f32
      %125 = vector.broadcast %cst_46 : f32 to vector<1x1x8x128xf32>
      %c0_47 = arith.constant 0 : index
      %c9_48 = arith.constant 9 : index
      %c8_49 = arith.constant 8 : index
      %c0_50 = arith.constant 0 : index
      %126 = vector.load %arg7[%c0_47, %c9_48, %c8_49, %c0_50] : memref<1x10x24x128xf32, #tpu.memory_space<vmem>>, vector<1x1x8x128xf32>
      tpu.vector_store %arg7[%c0_47, %c9_48, %c8_49, %c0_50], %125 {strides = array<i32>} : memref<1x10x24x128xf32, #tpu.memory_space<vmem>>, vector<1x1x8x128xf32>,
      %c0_51 = arith.constant 0 : index
      %c0_52 = arith.constant 0 : index
      %c0_53 = arith.constant 0 : index
      %c0_54 = arith.constant 0 : index
      %127 = vector.load %arg2[%c0_51, %c0_52, %c0_53, %c0_54] : memref<1x8x8x128xf32, #tpu.memory_space<vmem>>, vector<1x8x8x128xf32>
      %c0_55 = arith.constant 0 : index
      %c1_56 = arith.constant 1 : index
      %c8_57 = arith.constant 8 : index
      %c0_58 = arith.constant 0 : index
      %128 = vector.load %arg7[%c0_55, %c1_56, %c8_57, %c0_58] : memref<1x10x24x128xf32, #tpu.memory_space<vmem>>, vector<1x8x8x128xf32>
      tpu.vector_store %arg7[%c0_55, %c1_56, %c8_57, %c0_58], %127 {strides = array<i32>} : memref<1x10x24x128xf32, #tpu.memory_space<vmem>>, vector<1x8x8x128xf32>,
    } else {
    }
    %3 = arith.index_cast %arg1 : i32 to index
    %c0 = arith.constant 0 : index
    %c0_1 = arith.constant 0 : index
    %4 = vector.load %arg3[%3, %c0, %c0_1] : memref<3x9x128xf32, #tpu.memory_space<vmem>>, vector<1x9x128xf32>
    %5 = vector.shape_cast %4 : vector<1x9x128xf32> to vector<9x128xf32>
    %6 = arith.index_cast %arg1 : i32 to index
    %c0_2 = arith.constant 0 : index
    %c0_3 = arith.constant 0 : index
    %7 = vector.load %arg4[%6, %c0_2, %c0_3] : memref<3x4x128xf32, #tpu.memory_space<vmem>>, vector<1x4x128xf32>
    %8 = vector.shape_cast %7 : vector<1x4x128xf32> to vector<4x128xf32>
    %9 = vector.extract_strided_slice %8 {offsets = [0, 0], sizes = [1, 128], strides = [1, 1]} : vector<4x128xf32> to vector<1x128xf32>
    %10 = vector.extract_strided_slice %8 {offsets = [1, 0], sizes = [1, 128], strides = [1, 1]} : vector<4x128xf32> to vector<1x128xf32>
    %11 = vector.extract_strided_slice %8 {offsets = [2, 0], sizes = [1, 128], strides = [1, 1]} : vector<4x128xf32> to vector<1x128xf32>
    %12 = vector.extract_strided_slice %8 {offsets = [3, 0], sizes = [1, 128], strides = [1, 1]} : vector<4x128xf32> to vector<1x128xf32>
    %cst = arith.constant 0.000000e+00 : f32
    %13 = vector.broadcast %cst : f32 to vector<1x8x8x128xf32>
    %c0_4 = arith.constant 0 : index
    %c0_5 = arith.constant 0 : index
    %c7 = arith.constant 7 : index
    %c0_6 = arith.constant 0 : index
    %14 = vector.load %arg7[%c0_4, %c0_5, %c7, %c0_6] : memref<1x10x24x128xf32, #tpu.memory_space<vmem>>, vector<1x10x8x128xf32>
    %15 = vector.extract_strided_slice %14 {offsets = [0, 0, 0, 0], sizes = [1, 8, 8, 128], strides = [1, 1, 1, 1]} : vector<1x10x8x128xf32> to vector<1x8x8x128xf32>
    %16 = vector.extract_strided_slice %5 {offsets = [0, 0], sizes = [1, 128], strides = [1, 1]} : vector<9x128xf32> to vector<1x128xf32>
    %17 = vector.shape_cast %16 : vector<1x128xf32> to vector<1x1x1x128xf32>
    %18 = vector.broadcast %17 : vector<1x1x1x128xf32> to vector<1x8x8x128xf32>
    %19 = arith.mulf %15, %18 : vector<1x8x8x128xf32>
    %20 = arith.addf %13, %19 : vector<1x8x8x128xf32>
    %21 = vector.extract_strided_slice %14 {offsets = [0, 1, 0, 0], sizes = [1, 8, 8, 128], strides = [1, 1, 1, 1]} : vector<1x10x8x128xf32> to vector<1x8x8x128xf32>
    %22 = vector.extract_strided_slice %5 {offsets = [3, 0], sizes = [1, 128], strides = [1, 1]} : vector<9x128xf32> to vector<1x128xf32>
    %23 = vector.shape_cast %22 : vector<1x128xf32> to vector<1x1x1x128xf32>
    %24 = vector.broadcast %23 : vector<1x1x1x128xf32> to vector<1x8x8x128xf32>
    %25 = arith.mulf %21, %24 : vector<1x8x8x128xf32>
    %26 = arith.addf %20, %25 : vector<1x8x8x128xf32>
    %27 = vector.extract_strided_slice %14 {offsets = [0, 2, 0, 0], sizes = [1, 8, 8, 128], strides = [1, 1, 1, 1]} : vector<1x10x8x128xf32> to vector<1x8x8x128xf32>
    %28 = vector.extract_strided_slice %5 {offsets = [6, 0], sizes = [1, 128], strides = [1, 1]} : vector<9x128xf32> to vector<1x128xf32>
    %29 = vector.shape_cast %28 : vector<1x128xf32> to vector<1x1x1x128xf32>
    %30 = vector.broadcast %29 : vector<1x1x1x128xf32> to vector<1x8x8x128xf32>
    %31 = arith.mulf %27, %30 : vector<1x8x8x128xf32>
    %32 = arith.addf %26, %31 : vector<1x8x8x128xf32>
    %c0_7 = arith.constant 0 : index
    %c0_8 = arith.constant 0 : index
    %c8 = arith.constant 8 : index
    %c0_9 = arith.constant 0 : index
    %33 = vector.load %arg7[%c0_7, %c0_8, %c8, %c0_9] : memref<1x10x24x128xf32, #tpu.memory_space<vmem>>, vector<1x10x8x128xf32>
    %34 = vector.extract_strided_slice %33 {offsets = [0, 0, 0, 0], sizes = [1, 8, 8, 128], strides = [1, 1, 1, 1]} : vector<1x10x8x128xf32> to vector<1x8x8x128xf32>
    %35 = vector.extract_strided_slice %5 {offsets = [1, 0], sizes = [1, 128], strides = [1, 1]} : vector<9x128xf32> to vector<1x128xf32>
    %36 = vector.shape_cast %35 : vector<1x128xf32> to vector<1x1x1x128xf32>
    %37 = vector.broadcast %36 : vector<1x1x1x128xf32> to vector<1x8x8x128xf32>
    %38 = arith.mulf %34, %37 : vector<1x8x8x128xf32>
    %39 = arith.addf %32, %38 : vector<1x8x8x128xf32>
    %40 = vector.extract_strided_slice %33 {offsets = [0, 1, 0, 0], sizes = [1, 8, 8, 128], strides = [1, 1, 1, 1]} : vector<1x10x8x128xf32> to vector<1x8x8x128xf32>
    %41 = vector.extract_strided_slice %5 {offsets = [4, 0], sizes = [1, 128], strides = [1, 1]} : vector<9x128xf32> to vector<1x128xf32>
    %42 = vector.shape_cast %41 : vector<1x128xf32> to vector<1x1x1x128xf32>
    %43 = vector.broadcast %42 : vector<1x1x1x128xf32> to vector<1x8x8x128xf32>
    %44 = arith.mulf %40, %43 : vector<1x8x8x128xf32>
    %45 = arith.addf %39, %44 : vector<1x8x8x128xf32>
    %46 = vector.extract_strided_slice %33 {offsets = [0, 2, 0, 0], sizes = [1, 8, 8, 128], strides = [1, 1, 1, 1]} : vector<1x10x8x128xf32> to vector<1x8x8x128xf32>
    %47 = vector.extract_strided_slice %5 {offsets = [7, 0], sizes = [1, 128], strides = [1, 1]} : vector<9x128xf32> to vector<1x128xf32>
    %48 = vector.shape_cast %47 : vector<1x128xf32> to vector<1x1x1x128xf32>
    %49 = vector.broadcast %48 : vector<1x1x1x128xf32> to vector<1x8x8x128xf32>
    %50 = arith.mulf %46, %49 : vector<1x8x8x128xf32>
    %51 = arith.addf %45, %50 : vector<1x8x8x128xf32>
    %c0_10 = arith.constant 0 : index
    %c0_11 = arith.constant 0 : index
    %c9 = arith.constant 9 : index
    %c0_12 = arith.constant 0 : index
    %52 = vector.load %arg7[%c0_10, %c0_11, %c9, %c0_12] : memref<1x10x24x128xf32, #tpu.memory_space<vmem>>, vector<1x10x8x128xf32>
    %53 = vector.extract_strided_slice %52 {offsets = [0, 0, 0, 0], sizes = [1, 8, 8, 128], strides = [1, 1, 1, 1]} : vector<1x10x8x128xf32> to vector<1x8x8x128xf32>
    %54 = vector.extract_strided_slice %5 {offsets = [2, 0], sizes = [1, 128], strides = [1, 1]} : vector<9x128xf32> to vector<1x128xf32>
    %55 = vector.shape_cast %54 : vector<1x128xf32> to vector<1x1x1x128xf32>
    %56 = vector.broadcast %55 : vector<1x1x1x128xf32> to vector<1x8x8x128xf32>
    %57 = arith.mulf %53, %56 : vector<1x8x8x128xf32>
    %58 = arith.addf %51, %57 : vector<1x8x8x128xf32>
    %59 = vector.extract_strided_slice %52 {offsets = [0, 1, 0, 0], sizes = [1, 8, 8, 128], strides = [1, 1, 1, 1]} : vector<1x10x8x128xf32> to vector<1x8x8x128xf32>
    %60 = vector.extract_strided_slice %5 {offsets = [5, 0], sizes = [1, 128], strides = [1, 1]} : vector<9x128xf32> to vector<1x128xf32>
    %61 = vector.shape_cast %60 : vector<1x128xf32> to vector<1x1x1x128xf32>
    %62 = vector.broadcast %61 : vector<1x1x1x128xf32> to vector<1x8x8x128xf32>
    %63 = arith.mulf %59, %62 : vector<1x8x8x128xf32>
    %64 = arith.addf %58, %63 : vector<1x8x8x128xf32>
    %65 = vector.extract_strided_slice %52 {offsets = [0, 2, 0, 0], sizes = [1, 8, 8, 128], strides = [1, 1, 1, 1]} : vector<1x10x8x128xf32> to vector<1x8x8x128xf32>
    %66 = vector.extract_strided_slice %5 {offsets = [8, 0], sizes = [1, 128], strides = [1, 1]} : vector<9x128xf32> to vector<1x128xf32>
    %67 = vector.shape_cast %66 : vector<1x128xf32> to vector<1x1x1x128xf32>
    %68 = vector.broadcast %67 : vector<1x1x1x128xf32> to vector<1x8x8x128xf32>
    %69 = arith.mulf %65, %68 : vector<1x8x8x128xf32>
    %70 = arith.addf %64, %69 : vector<1x8x8x128xf32>
    %71 = vector.shape_cast %9 : vector<1x128xf32> to vector<1x1x1x128xf32>
    %72 = vector.broadcast %71 : vector<1x1x1x128xf32> to vector<1x8x8x128xf32>
    %73 = arith.addf %70, %72 : vector<1x8x8x128xf32>
    %74 = arith.mulf %73, %73 : vector<1x8x8x128xf32>
    %75 = arith.mulf %73, %74 : vector<1x8x8x128xf32>
    %cst_13 = arith.constant 4.471500e-02 : f32
    %76 = vector.broadcast %cst_13 : f32 to vector<1x8x8x128xf32>
    %77 = arith.mulf %76, %75 : vector<1x8x8x128xf32>
    %78 = arith.addf %73, %77 : vector<1x8x8x128xf32>
    %cst_14 = arith.constant 0.797884583 : f32
    %79 = vector.broadcast %cst_14 : f32 to vector<1x8x8x128xf32>
    %80 = arith.mulf %79, %78 : vector<1x8x8x128xf32>
    %81 = math.tanh %80 : vector<1x8x8x128xf32>
    %cst_15 = arith.constant 1.000000e+00 : f32
    %82 = vector.broadcast %cst_15 : f32 to vector<1x8x8x128xf32>
    %83 = arith.addf %82, %81 : vector<1x8x8x128xf32>
    %cst_16 = arith.constant 5.000000e-01 : f32
    %84 = vector.broadcast %cst_16 : f32 to vector<1x8x8x128xf32>
    %85 = arith.mulf %84, %83 : vector<1x8x8x128xf32>
    %86 = arith.mulf %73, %85 : vector<1x8x8x128xf32>
    %87 = vector.shape_cast %86 : vector<1x8x8x128xf32> to vector<64x128xf32>
    %88 = arith.truncf %87 : vector<64x128xf32> to vector<64x128xbf16>
    %89 = arith.index_cast %arg1 : i32 to index
    %c0_17 = arith.constant 0 : index
    %c0_18 = arith.constant 0 : index
    %90 = vector.load %arg5[%89, %c0_17, %c0_18] : memref<3x128x128xbf16, #tpu.memory_space<vmem>>, vector<1x128x128xbf16>
    %91 = vector.shape_cast %90 : vector<1x128x128xbf16> to vector<128x128xbf16>
    %cst_19 = arith.constant dense<0.000000e+00> : vector<64x128xf32>
    %92 = tpu.matmul %88, %91, %cst_19 {dimension_numbers = #tpu.dot_dimension_numbers<[1], [0], [0], [1], [0, 0, 1, 1], [], []>} : vector<64x128xbf16>, vector<128x128xbf16>, vector<64x128xf32> -> vector<64x128xf32>
    %93 = vector.broadcast %10 : vector<1x128xf32> to vector<64x128xf32>
    %94 = arith.addf %92, %93 : vector<64x128xf32>
    %95 = arith.mulf %94, %94 : vector<64x128xf32>
    %96 = arith.mulf %94, %95 : vector<64x128xf32>
    %cst_20 = arith.constant 4.471500e-02 : f32
    %97 = vector.broadcast %cst_20 : f32 to vector<64x128xf32>
    %98 = arith.mulf %97, %96 : vector<64x128xf32>
    %99 = arith.addf %94, %98 : vector<64x128xf32>
    %cst_21 = arith.constant 0.797884583 : f32
    %100 = vector.broadcast %cst_21 : f32 to vector<64x128xf32>
    %101 = arith.mulf %100, %99 : vector<64x128xf32>
    %102 = math.tanh %101 : vector<64x128xf32>
    %cst_22 = arith.constant 1.000000e+00 : f32
    %103 = vector.broadcast %cst_22 : f32 to vector<64x128xf32>
    %104 = arith.addf %103, %102 : vector<64x128xf32>
    %cst_23 = arith.constant 5.000000e-01 : f32
    %105 = vector.broadcast %cst_23 : f32 to vector<64x128xf32>
    %106 = arith.mulf %105, %104 : vector<64x128xf32>
    %107 = arith.mulf %94, %106 : vector<64x128xf32>
    %108 = vector.broadcast %11 : vector<1x128xf32> to vector<64x128xf32>
    %109 = arith.mulf %107, %108 : vector<64x128xf32>
    %110 = vector.broadcast %12 : vector<1x128xf32> to vector<64x128xf32>
    %111 = arith.addf %109, %110 : vector<64x128xf32>
    %c0_24 = arith.constant 0 : index
    %c1 = arith.constant 1 : index
    %c8_25 = arith.constant 8 : index
    %c0_26 = arith.constant 0 : index
    %112 = vector.load %arg7[%c0_24, %c1, %c8_25, %c0_26] : memref<1x10x24x128xf32, #tpu.memory_space<vmem>>, vector<1x8x8x128xf32>
    %113 = vector.shape_cast %111 : vector<64x128xf32> to vector<1x8x8x128xf32>
    %114 = arith.addf %113, %112 : vector<1x8x8x128xf32>
    %c0_27 = arith.constant 0 : index
    %c1_28 = arith.constant 1 : index
    %c8_29 = arith.constant 8 : index
    %c0_30 = arith.constant 0 : index
    %115 = vector.load %arg7[%c0_27, %c1_28, %c8_29, %c0_30] : memref<1x10x24x128xf32, #tpu.memory_space<vmem>>, vector<1x8x8x128xf32>
    tpu.vector_store %arg7[%c0_27, %c1_28, %c8_29, %c0_30], %114 {strides = array<i32>} : memref<1x10x24x128xf32, #tpu.memory_space<vmem>>, vector<1x8x8x128xf32>,
    %c2_i32 = arith.constant 2 : i32
    %116 = arith.cmpi eq, %arg1, %c2_i32 : i32
    %117 = arith.extui %116 : i1 to i32
    %c0_i32_31 = arith.constant 0 : i32
    %118 = arith.cmpi ne, %117, %c0_i32_31 : i32
    scf.if %118 {
      %c0_32 = arith.constant 0 : index
      %c0_33 = arith.constant 0 : index
      %c0_34 = arith.constant 0 : index
      %c0_35 = arith.constant 0 : index
      %119 = vector.load %arg6[%c0_32, %c0_33, %c0_34, %c0_35] : memref<1x8x8x128xf32, #tpu.memory_space<vmem>>, vector<1x8x8x128xf32>
      tpu.vector_store %arg6[%c0_32, %c0_33, %c0_34, %c0_35], %114 {strides = array<i32>} : memref<1x8x8x128xf32, #tpu.memory_space<vmem>>, vector<1x8x8x128xf32>,
    } else {
    }
    return
  }
  func.func @transform_0(%arg0: i32, %arg1: i32) -> (i32, i32, i32, i32) {
    %c0_i32 = arith.constant 0 : i32
    %c0_i32_0 = arith.constant 0 : i32
    %c0_i32_1 = arith.constant 0 : i32
    %c0_i32_2 = arith.constant 0 : i32
    return %arg0, %c0_i32, %c0_i32_0, %c0_i32_1 : i32, i32, i32, i32
  }
  func.func @transform_1(%arg0: i32, %arg1: i32) -> (i32, i32, i32) {
    %c0_i32 = arith.constant 0 : i32
    %c0_i32_0 = arith.constant 0 : i32
    %c0_i32_1 = arith.constant 0 : i32
    %c0_i32_2 = arith.constant 0 : i32
    return %c0_i32, %c0_i32_0, %c0_i32_1 : i32, i32, i32
  }
  func.func @transform_2(%arg0: i32, %arg1: i32) -> (i32, i32, i32) {
    %c0_i32 = arith.constant 0 : i32
    %c0_i32_0 = arith.constant 0 : i32
    %c0_i32_1 = arith.constant 0 : i32
    %c0_i32_2 = arith.constant 0 : i32
    return %c0_i32, %c0_i32_0, %c0_i32_1 : i32, i32, i32
  }
  func.func @transform_3(%arg0: i32, %arg1: i32) -> (i32, i32, i32) {
    %c0_i32 = arith.constant 0 : i32
    %c0_i32_0 = arith.constant 0 : i32
    %c0_i32_1 = arith.constant 0 : i32
    %c0_i32_2 = arith.constant 0 : i32
    return %c0_i32, %c0_i32_0, %c0_i32_1 : i32, i32, i32
  }
  func.func @transform_4(%arg0: i32, %arg1: i32) -> (i32, i32, i32, i32) {
    %c0_i32 = arith.constant 0 : i32
    %c0_i32_0 = arith.constant 0 : i32
    %c0_i32_1 = arith.constant 0 : i32
    %c0_i32_2 = arith.constant 0 : i32
    return %arg0, %c0_i32, %c0_i32_0, %c0_i32_1 : i32, i32, i32, i32
  }
}

</mosaic_0001>

<bundles_post_ra>
// kernel: tpu_custom_call.1
= control target key start
LH: loop header
LB: loop body
LE: loop exit
PB: predicated region body
PF: predicated region fallthrough
CT: control target
= control target key end

     0   :  { %s2219_s0 = inlined_call_operand.hbm [shape: f32[2,8,8,128], index: 0, kind: input, shape index: {}]   ;;  %s2220_s1 = inlined_call_operand.hbm [shape: f32[3,9,128], index: 1, kind: input, shape index: {}]   ;;  %s2221_s2 = inlined_call_operand.hbm [shape: f32[3,4,128], index: 2, kind: input, shape index: {}]   ;;  %s2222_s3 = inlined_call_operand.hbm [shape: bf16[3,128,128], index: 3, kind: input, shape index: {}]   ;;  %s2223_s4 = inlined_call_operand.hbm [shape: f32[2,8,8,128], index: 4, kind: output, shape index: {}]  }
   0x1   :  { %2232 = sst [smem:[#allocation18_spill]] %s2220_s1 }
   0x2   :  { %9 = vsyncpa [#allocation4], 0 }
   0x3   :  { %11 = vsyncpa [#allocation4 + $0x1], 0 }
   0x4   :  { %12 = vsyncpa [#allocation7], 0 }
   0x5   :  { %13 = vsyncpa [#allocation10], 0 }
   0x6   :  { %14 = vsyncpa [#allocation5], 0 }
   0x7   :  { %16 = vsyncpa [#allocation5 + $0x1], 0  ;;  %s1528_s15 = smov 0   ;;  %s1530_s16 = smov 0  }
   0x8   :  { %s1532_s17 = smov 0   ;;  %s1534_s18 = smov 0  }
   0x9   :  { %s1536_s19 = smov 0   ;;  %s1538_s20 = smov 0  }
   0xa   :  { %s1540_s21 = smov 0   ;;  %s1542_s22 = smov 0  }
   0xb LB: > { %2233 = sst [smem:[#allocation16_spill]] %s1461_s15  ;;  %s1023_s23 = sadd.s32 4294967295, %s1489_s22   ;;  %s1489_s22 = sphi %s1542_s22, %s22_s22   ;;  %s1485_s21 = sphi %s1540_s21, %s2260_s21   ;;  %s1481_s20 = sphi %s1538_s20, %s2259_s20   ;;  %s1477_s19 = sphi %s1536_s19, %s2258_s19   ;;  %s1473_s18 = sphi %s1534_s18, %s2257_s18   ;;  %s1469_s17 = sphi %s1532_s17, %s2256_s17   ;;  %s1465_s16 = sphi %s1530_s16, %s2255_s16   ;;  %s1461_s15 = sphi %s1528_s15, %s2254_s15  }
   0xc   : > { %s1024_s24 = sadd.s32 4294967294, %s1489_s22   ;;  %p54_p0 = scmp.ne.s32.totalorder %s1465_s16, %s1461_s15 }
   0xd   : > { %p1572_p1 = scmp.eq.s32.totalorder %s1023_s23, 0  ;;  %p1576_p2 = scmp.eq.s32.totalorder %s1023_s23, 5 }
   0xe   : > { %p147_p3 = scmp.eq.s32.totalorder %s1024_s24, 5  ;;  %p1025_p5 = scmp.ge.s32.totalorder %s1489_s22, 1 }
   0xf   : > { %s2234_s25 = scalar_select %p1572_p1, 1, 0 }
  0x10   : > { %s2235_s26 = scalar_select %p1576_p2, 1, 0 }
  0x11   : > { %p1582_p4 = por %p1572_p1, %p54_p0  ;;  %p1587_p6 = por %p147_p3, %p54_p0 }
  0x12   : > { %p154_p7 = scmp.lt.s32.totalorder %s1489_s22, 7  ;;  %s1491_s30 = smov [#allocation6]  }
  0x13   : > { %s2236_s27 = scalar_select %p1582_p4, 1, 0 }
  0x14   : > { %s2237_s28 = scalar_select %p1587_p6, 1, 0 }
  0x15   : > { %p1592_p8 = pnand %p1025_p5, %p154_p7  ;;  %s166_s5 = sshll.u32 %s1491_s30, 4  ;;  %s167_s5 = int_to_ptr.vmem [resolvable:$true] %s166_s5 }
  0x16   : > { %2238 = sst [smem:[#allocation17_spill]] %s2237_s28  ;;  %s1492_s7 = smov [#allocation8]  }
  0x17   : > { %s2239_s29 = scalar_select %p1592_p8, 1, 0 }
  0x18   : > { %p1129_p9 = pneg %p1592_p8  ;;  %s179_s8 = sshll.u32 %s1492_s7, 4  ;;  %s1604_s8 = int_to_ptr.vmem [resolvable:$true] %s179_s8 }
  0x19   : > { %s2241_s1 = sld [smem:[#allocation18_spill]] }
  0x1a   : > { %p1600_p10 = pnand %p1129_p9, %p1572_p1 }
  0x1c   : > { %p1614_p12 = pneg %p1600_p10 }
  0x1f   : > { %s1269_s11 = scalar_lea.hbm %s2241_s1, 768 }
  0x20   : > { %p1270_p11 = scmp.ne.s32.totalorder %s2241_s1, %s1269_s11  ;;  %p1276_p3 = scmp.lt.u32.totalorder %s1269_s11, %s2241_s1 }
  0x22   : > { %p1272_p13 = pnand %p1614_p12, %p1270_p11 }
  0x24   : > { %p1273_p0 = pneg %p1272_p13 }
  0x26   : > { %p1278_p5 = pnand %p1276_p3, %p1273_p0 }
  0x28   : > { %1281 = shalt.err (!%p1278_p5)
}
  0x29   : > { %s1282_s30 = scalar_lea.vmem %s167_s5, 768  ;;  %p1290_p1 = scmp.lt.s32.totalorder %s167_s5, %s167_s5 }
  0x2a   : > { %p1283_p7 = scmp.ne.s32.totalorder %s167_s5, %s1282_s30  ;;  %p1291_p4 = scmp.lt.s32.totalorder %s1282_s30, %s1282_s30 }
  0x2c   : > { %p1285_p9 = pnand %p1283_p7, %p1614_p12  ;;  %p1292_p8 = por %p1291_p4, %p1290_p1 }
  0x2e   : > { %p1286_p6 = pneg %p1285_p9 }
  0x30   : > { %p1293_p2 = pnand %p1292_p8, %p1286_p6 }
  0x32   : > { %1296 = shalt.err (!%p1293_p2)
}
  0x33   : > { %s2230_s7 = smov 128   ;;  %s2231_s9 = smov 8  }
  0x34   : > { %1132 = dma.hbm_to_vmem [thread:$0]  (!%p1600_p10), %s2241_s1, 768, %s167_s5, [#allocation7], %s2230_s7, %s2230_s7, %s2231_s9  }
  0x35   : > { %s1297_s23 = scalar_lea.hbm %s2221_s2, 192 }
  0x36   : > { %p1298_p1 = scmp.ne.s32.totalorder %s2221_s2, %s1297_s23  ;;  %p1304_p6 = scmp.lt.u32.totalorder %s1297_s23, %s2221_s2 }
  0x38   : > { %p1300_p2 = pnand %p1298_p1, %p1614_p12 }
  0x3a   : > { %p1301_p4 = pneg %p1300_p2 }
  0x3c   : > { %p1306_p8 = pnand %p1304_p6, %p1301_p4 }
  0x3e   : > { %1309 = shalt.err (!%p1306_p8)
}
  0x3f   : > { %s1310_s5 = scalar_lea.vmem %s1604_s8, 192  ;;  %p1318_p3 = scmp.lt.s32.totalorder %s1604_s8, %s1604_s8 }
  0x40   : > { %p1311_p11 = scmp.ne.s32.totalorder %s1604_s8, %s1310_s5  ;;  %p1319_p5 = scmp.lt.s32.totalorder %s1310_s5, %s1310_s5 }
  0x42   : > { %p1313_p13 = pnand %p1311_p11, %p1614_p12  ;;  %p1320_p7 = por %p1319_p5, %p1318_p3 }
  0x44   : > { %p1314_p0 = pneg %p1313_p13 }
  0x46   : > { %p1321_p9 = pnand %p1320_p7, %p1314_p0 }
  0x48   : > { %1324 = shalt.err (!%p1321_p9)
}
  0x49   : > { %s1495_s10 = smov 64   ;;  %s1496_s15 = smov 4  }
  0x4a   : > { %1135 = dma.hbm_to_vmem [thread:$0]  (!%p1600_p10), %s2221_s2, 192, %s1604_s8, [#allocation7], %s1495_s10, %s1495_s10, %s1496_s15  }
  0x4b   : > { %s1497_s12 = smov [#allocation9]   ;;  %s1325_s30 = scalar_lea.hbm %s2222_s3, 3072 }
  0x4c   : > { %s192_s13 = sshll.u32 %s1497_s12, 4  ;;  %p1326_p1 = scmp.ne.s32.totalorder %s2222_s3, %s1325_s30  ;;  %s193_s13 = int_to_ptr.vmem [resolvable:$true] %s192_s13 }
  0x4d   : > { %p1332_p6 = scmp.lt.u32.totalorder %s1325_s30, %s2222_s3 }
  0x4e   : > { %p1328_p2 = pnand %p1326_p1, %p1614_p12 }
  0x50   : > { %p1329_p4 = pneg %p1328_p2 }
  0x52   : > { %p1334_p8 = pnand %p1332_p6, %p1329_p4 }
  0x54   : > { %1337 = shalt.err (!%p1334_p8)
}
  0x55   : > { %s1338_s8 = scalar_lea.vmem %s193_s13, 3072  ;;  %p1346_p3 = scmp.lt.s32.totalorder %s193_s13, %s193_s13 }
  0x56   : > { %p1339_p11 = scmp.ne.s32.totalorder %s193_s13, %s1338_s8  ;;  %p1347_p5 = scmp.lt.s32.totalorder %s1338_s8, %s1338_s8 }
  0x58   : > { %p1341_p13 = pnand %p1339_p11, %p1614_p12  ;;  %p1348_p7 = por %p1347_p5, %p1346_p3 }
  0x5a   : > { %p1342_p0 = pneg %p1341_p13 }
  0x5c   : > { %p1349_p9 = pnand %p1348_p7, %p1342_p0 }
  0x5e   : > { %1352 = shalt.err (!%p1349_p9)
}
  0x5f   : > { %1138 = dma.hbm_to_vmem [thread:$0]  (!%p1600_p10), %s2222_s3, 3072, %s193_s13, [#allocation10], %s1495_s10, %s1495_s10, %s1496_s15  }
  0x60   : > { %s31_s1 = sadd.s32 1, %s1481_s20  ;;  %s34_s14 = sadd.s32 1, %s1485_s21 }
  0x61   : > { %p32_p12 = scmp.ge.s32.totalorder %s31_s1, 3  ;;  %s41_s6 = sadd.s32 1, %s1469_s17 }
  0x62   : > { %p48_p1 = scmp.ne.s32.totalorder %s1469_s17, %s1465_s16  ;;  %p49_p2 = scmp.eq.s32.totalorder %s1489_s22, 0 }
  0x63   : > { %s2262_s1 = smov (%p32_p12, %s31_s1), 0  ;;  %s2264_s14 = smov (!%p32_p12, %s34_s14), %s1485_s21 }
  0x64   : > { %p2243_p4 = scmp.ne.s32.totalorder %s2235_s26, 0  ;;  %p36_p8 = scmp.ge.s32.totalorder %s2264_s14, 2 }
  0x65   : > { %p1150_p10 = scmp.lt.s32.totalorder %s1489_s22, 6  ;;  %p50_p11 = por %p49_p2, %p48_p1 }
  0x66   : > { %p1685_p6 = por %p2243_p4, %p48_p1  ;;  %s206_s10 = sand.u32 1, %s1469_s17  }
  0x67   : > { %s2266_s14 = smov (%p36_p8, %s2264_s14), 0  ;;  %s1030_s15 = sshll.u32 %s206_s10, 6 }
  0x68   : > { %s38_s11 = ssub.s32 %s1485_s21, %s2266_s14  ;;  %s1058_s12 = sshll.u32 %s1485_s21, 10 }
  0x69   : > { %p39_p13 = scmp.eq.s32.totalorder %s38_s11, 0  ;;  %s1699_s26 = scalar_lea.hbm %s2219_s0, %s1058_s12 }
  0x6a   : > { %s210_s24 = scalar_lea.vmem [#allocation3], %s1030_s15  ;;  %p1708_p0 = pnand %p1150_p10, %p50_p11 }
  0x6b   : > { %s217_s30 = sshll.u32 %s210_s24, 4  ;;  %s1712_s7 = scalar_lea.sflag [#allocation4], %s206_s10  ;;  %s1704_s30 = int_to_ptr.vmem [resolvable:$true] %s217_s30 }
  0x6c   : > { %s1702_s5 = scalar_select %p39_p13, %s1469_s17, %s41_s6  }
  0x6d   : > { %s1353_s28 = scalar_lea.hbm %s1699_s26, 1024  ;;  %p1355_p5 = pneg %p1708_p0 }
  0x6e   : > { %p1354_p3 = scmp.ne.s32.totalorder %s1699_s26, %s1353_s28  ;;  %s1358_s11 = scalar_lea.hbm %s2219_s0, 2048 }
  0x6f   : > { %p1359_p12 = scmp.lt.u32.totalorder %s1699_s26, %s2219_s0  ;;  %p1360_p1 = scmp.lt.u32.totalorder %s1358_s11, %s1353_s28 }
  0x70   : > { %p1356_p7 = pnand %p1355_p5, %p1354_p3  ;;  %p1362_p4 = scmp.lt.u32.totalorder %s1353_s28, %s1699_s26 }
  0x71   : > { %p1361_p2 = por %p1360_p1, %p1359_p12 }
  0x72   : > { %p1357_p9 = pneg %p1356_p7 }
  0x73   : > { %p1363_p8 = por %p1362_p4, %p1361_p2 }
  0x75   : > { %p1364_p10 = pnand %p1363_p8, %p1357_p9 }
  0x77   : > { %1367 = shalt.err (!%p1364_p10)
}
  0x78   : > { %s1368_s10 = scalar_lea.vmem %s1704_s30, 1024  ;;  %s1498_s23 = smov [#allocation3]  }
  0x79   : > { %p1369_p11 = scmp.ne.s32.totalorder %s1704_s30, %s1368_s10  ;;  %s1373_s24 = sshll.u32 %s1498_s23, 4  ;;  %s1374_s24 = int_to_ptr.vmem [resolvable:$false] %s1373_s24 }
  0x7a   : > { %s1375_s6 = scalar_lea.vmem %s1374_s24, 2048  ;;  %p1376_p7 = scmp.lt.s32.totalorder %s1704_s30, %s1374_s24 }
  0x7b   : > { %p1371_p13 = pnand %p1369_p11, %p1355_p5  ;;  %p1377_p12 = scmp.lt.s32.totalorder %s1375_s6, %s1368_s10 }
  0x7d   : > { %p1372_p3 = pneg %p1371_p13  ;;  %p1378_p1 = por %p1377_p12, %p1376_p7 }
  0x7f   : > { %p1379_p2 = pnand %p1378_p1, %p1372_p3 }
  0x81   : > { %1382 = shalt.err (!%p1379_p2)
}
  0x82   : > { %s2246_s28 = smov 8   ;;  %s2247_s15 = smov 128  }
  0x83   : > { %1142 = dma.hbm_to_vmem [thread:$0]  (!%p1708_p0), %s1699_s26, 1024, %s1704_s30, %s1712_s7, %s2247_s15, %s2247_s15, %s2246_s28  }
  0x84   : > { %p2248_p5 = scmp.ne.s32.totalorder %s2239_s29, 0 }
  0x85   : > { %s1746_s11 = sand.u32 (!%p2248_p5), 1, %s1465_s16   ;;  %p2249_p9 = scmp.ne.s32.totalorder (!%p2248_p5), %s2236_s27, 0 }
  0x86   : > { %229 = sbr.rel (%p2248_p5) target bundleno = 532 (0x214), region = 36  ;;  %s1034_s12 = sshll.u32 (!%p2248_p5), %s1746_s11, 6 }
  0x87   : > { %s232_s13 = scalar_lea.sflag (!%p2248_p5), [#allocation4], %s1746_s11  ;;  %s1750_s10 = scalar_lea.vmem (!%p2248_p5), [#allocation3], %s1034_s12 }
  0x8d   : > { %1444 = dma.done.wait (%p2249_p9), %s232_s13, 1024  }
  0x8e   : > { %1446 = vsyncadd (%p2249_p9), %s232_s13, 4294966272  ;;  %p2250_p0 = scmp.ne.s32.totalorder %s2234_s25, 0 }
  0x90   : > { %1448 = dma.done.wait (%p2250_p0), [#allocation7], 960  }
  0x91   : > { %1450 = vsyncadd (%p2250_p0), [#allocation7], 4294966336 }
  0x92   : > { %1452 = dma.done.wait (%p2250_p0), [#allocation10], 3072  }
  0x93   : > { %1454 = vsyncadd (%p2250_p0), [#allocation10], 4294964224  ;;  %s1764_s29 = scalar_lea.vmem [#allocation11], %s1034_s12  ;;  %p1039_p4 = scmp.ne.s32.totalorder %s1473_s18, 0 }
  0x94   : > { %v300_v0 = vld [vmem:[%s1750_s10] sm:$0xff] (!%p1039_p4)  ;;  %v301_v1 = vld [vmem:[%s1750_s10 + $0x8] sm:$0xff] (!%p1039_p4)  ;;  %v302_v2 = vld [vmem:[%s1750_s10 + $0x10] sm:$0xff] (!%p1039_p4)  ;;  %v1499_v3 = vmov (!%p1039_p4), 0.0  }
  0x95   : > { %276 = sbr.rel (%p1039_p4) target bundleno = 164 (0xa4), region = 56  ;;  %277 = vst [vmem:[#allocation2] sm:$0xff] (!%p1039_p4), %v1499_v3  ;;  %278 = vst [vmem:[#allocation2 + $0x18] sm:$0xff] (!%p1039_p4), %v1499_v3  ;;  %v303_v4 = vld [vmem:[%s1750_s10 + $0x18] sm:$0xff] (!%p1039_p4)  ;;  %v304_v5 = vld [vmem:[%s1750_s10 + $0x20] sm:$0xff] (!%p1039_p4) }
  0x96   : > { %279 = vst [vmem:[#allocation2 + $0x30] sm:$0xff] (!%p1039_p4), %v1499_v3  ;;  %280 = vst [vmem:[#allocation2 + $0x48] sm:$0xff] (!%p1039_p4), %v1499_v3  ;;  %v305_v6 = vld [vmem:[%s1750_s10 + $0x28] sm:$0xff] (!%p1039_p4)  ;;  %v306_v7 = vld [vmem:[%s1750_s10 + $0x30] sm:$0xff] (!%p1039_p4) }
  0x97   : > { %281 = vst [vmem:[#allocation2 + $0x60] sm:$0xff] (!%p1039_p4), %v1499_v3  ;;  %282 = vst [vmem:[#allocation2 + $0x78] sm:$0xff] (!%p1039_p4), %v1499_v3  ;;  %v307_v8 = vld [vmem:[%s1750_s10 + $0x38] sm:$0xff] (!%p1039_p4) }
  0x98   : > { %283 = vst [vmem:[#allocation2 + $0x90] sm:$0xff] (!%p1039_p4), %v1499_v3  ;;  %284 = vst [vmem:[#allocation2 + $0xa8] sm:$0xff] (!%p1039_p4), %v1499_v3 }
  0x99   : > { %285 = vst [vmem:[#allocation2 + $0xc0] sm:$0xff] (!%p1039_p4), %v1499_v3  ;;  %286 = vst [vmem:[#allocation2 + $0xd8] sm:$0xff] (!%p1039_p4), %v1499_v3 }
  0x9a   : > { %287 = vst [vmem:[#allocation2 + $0x10] sm:$0xff] (!%p1039_p4), %v1499_v3  ;;  %288 = vst [vmem:[#allocation2 + $0x28] sm:$0xff] (!%p1039_p4), %v1499_v3 }
  0x9b   : > { %289 = vst [vmem:[#allocation2 + $0x40] sm:$0xff] (!%p1039_p4), %v1499_v3  ;;  %290 = vst [vmem:[#allocation2 + $0x58] sm:$0xff] (!%p1039_p4), %v1499_v3 }
  0x9c   : > { %291 = vst [vmem:[#allocation2 + $0x70] sm:$0xff] %v1499_v3  ;;  %292 = vst [vmem:[#allocation2 + $0x88] sm:$0xff] %v1499_v3 }
  0x9d   : > { %293 = vst [vmem:[#allocation2 + $0xa0] sm:$0xff] %v1499_v3  ;;  %294 = vst [vmem:[#allocation2 + $0xb8] sm:$0xff] %v1499_v3 }
  0x9e   : > { %295 = vst [vmem:[#allocation2 + $0xd0] sm:$0xff] %v1499_v3  ;;  %296 = vst [vmem:[#allocation2 + $0xe8] sm:$0xff] %v1499_v3 }
  0x9f   : > { %297 = vst [vmem:[#allocation2 + $0x8] sm:$0xff] %v1499_v3  ;;  %299 = vst [vmem:[#allocation2 + $0xe0] sm:$0xff] %v1499_v3 }
  0xa0   : > { %309 = vst [vmem:[#allocation2 + $0x20] sm:$0xff] %v300_v0  ;;  %310 = vst [vmem:[#allocation2 + $0x38] sm:$0xff] %v301_v1 }
  0xa1   : > { %311 = vst [vmem:[#allocation2 + $0x50] sm:$0xff] %v302_v2  ;;  %312 = vst [vmem:[#allocation2 + $0x68] sm:$0xff] %v303_v4 }
  0xa2   : > { %313 = vst [vmem:[#allocation2 + $0x80] sm:$0xff] %v304_v5  ;;  %314 = vst [vmem:[#allocation2 + $0x98] sm:$0xff] %v305_v6 }
  0xa3   : > { %315 = vst [vmem:[#allocation2 + $0xb0] sm:$0xff] %v306_v7  ;;  %316 = vst [vmem:[#allocation2 + $0xc8] sm:$0xff] %v307_v8 }
  0xa4 PF: > { %s1059_s25 = sshll.u32 %s1473_s18, 6  ;;  %v334_v9 = vlaneseq  ;;  %s1040_s26 = sshll.u32 %s1473_s18, 4 }
  0xa5   : > { %s1776_s27 = scalar_lea.vmem [#allocation9], %s1059_s25  ;;  %s318_s30 = scalar_lea.vmem [#allocation6], %s1040_s26 }
  0xa6   : > { %v1229_v10 = vld [vmem:[%s1776_s27] sm:$0xff]   ;;  %v1230_v11 = vld [vmem:[%s1776_s27 + $0x8] sm:$0xff]   ;;  %v1781_v12 = vshrl.u32 %v334_v9, 7  ;;  %v1231_v13 = vld [vmem:[%s1776_s27 + $0x10] sm:$0xff]   ;;  %s1041_s8 = sshll.u32 %s1473_s18, 2  ;;  %p1052_p8 = scmp.ne.s32.totalorder %s1473_s18, 2 }
  0xa7   : > { %1073 = vmatprep.subr.bf16.mxu0 %v1229_v10  ;;  %1097 = vmatprep.subr.bf16.mxu1 %v1229_v10  ;;  %v324_v17 = vld [vmem:[#allocation2 + $0x7] sm:$0xff]  ;;  %v1232_v19 = vld [vmem:[%s1776_s27 + $0x18] sm:$0xff]   ;;  %s322_s7 = scalar_lea.vmem [#allocation8], %s1041_s8 }
  0xa8   : > { %1074 = vmatpush3.bf16.msra.mxu0 %v1229_v10  ;;  %1105 = vmatpush3.bf16.msra.mxu1 %v1229_v10  ;;  %v336_v14 = vsub.s32 0, %v1781_v12  ;;  %v356_v15 = vsub.s32 3, %v1781_v12  ;;  %v376_v16 = vsub.s32 6, %v1781_v12  ;;  %v406_v18 = vsub.s32 1, %v1781_v12  ;;  %v319_v20 = vld [vmem:[%s318_s30] sm:$0xff]  ;;  %v1791_v23 = vld [vmem:[#allocation2 + $0x37] sm:$0xff] }
  0xa9   : > { %1075 = vmatprep.subr.bf16.mxu0 %v1230_v11  ;;  %1098 = vmatprep.subr.bf16.mxu1 %v1230_v11  ;;  %v325_v21 = vld [vmem:[#allocation2 + $0x1f] sm:$0xff]  ;;  %v426_v22 = vsub.s32 4, %v1781_v12  ;;  %v1793_v24 = vld [vmem:[#allocation2 + $0x4f] sm:$0xff]  ;;  %v446_v32 = vsub.s32 7, %v1781_v12  ;;  %v476_v33 = vsub.s32 2, %v1781_v12  ;;  %v496_v38 = vsub.s32 5, %v1781_v12 }
  0xaa   : > { %v1797_v25 = vrot.slane %v319_v20, %v336_v14  ;;  %v1801_v26 = vrot.slane %v319_v20, %v356_v15  ;;  %v1803_v27 = vrot.slane %v319_v20, %v376_v16  ;;  %v1807_v28 = vrot.slane %v319_v20, %v406_v18  ;;  %v394_v29 = vld [vmem:[#allocation2 + $0x8] sm:$0xff]  ;;  %v1809_v30 = vld [vmem:[#allocation2 + $0x20] sm:$0xff]  ;;  %v1818_v37 = vld [vmem:[#allocation2 + $0x38] sm:$0xff] }
  0xab   : > { %v1811_v31 = vrot.slane %v319_v20, %v426_v22  ;;  %v1233_v39 = vld [vmem:[%s1776_s27 + $0x20] sm:$0xff]   ;;  %v1822_v40 = vld [vmem:[%s318_s30 + $0x8] ss:$0 sm:$0xff]  ;;  %v1837_v50 = vrot.slane %v319_v20, %v446_v32  ;;  %v464_v51 = vld [vmem:[#allocation2 + $0x9] sm:$0xff]  ;;  %v1843_v54 = vrot.slane %v319_v20, %v476_v33  ;;  %v1851_v58 = vrot.slane %v319_v20, %v496_v38 }
  0xac   : > { %1076 = vmatpush3.bf16.msra.mxu0 %v1230_v11  ;;  %1106 = vmatpush3.bf16.msra.mxu1 %v1230_v11  ;;  %v338_v34 = vmul.f32 %v1797_v25, %v324_v17  ;;  %v339_v35 = vmul.f32 %v1797_v25, %v325_v21  ;;  %v358_v36 = vmul.f32 %v1801_v26, %v325_v21  ;;  %v465_v52 = vld [vmem:[#allocation2 + $0x21] sm:$0xff]  ;;  %v1839_v53 = vld [vmem:[#allocation2 + $0x39] sm:$0xff]  ;;  %v1849_v57 = vld [vmem:[#allocation2 + $0x50] sm:$0xff] }
  0xad   : > { %1077 = vmatprep.subr.bf16.mxu0 %v1231_v13  ;;  %1099 = vmatprep.subr.bf16.mxu1 %v1231_v13  ;;  %v359_v41 = vmul.f32 %v1801_v26, %v1791_v23  ;;  %v378_v42 = vmul.f32 %v1803_v27, %v1791_v23  ;;  %v379_v43 = vmul.f32 %v1803_v27, %v1793_v24  ;;  %v1847_v55 = vld [vmem:[%s322_s7] sm:$0xf]  ;;  %v1234_v60 = vld [vmem:[%s1776_s27 + $0x28] sm:$0xff]   ;;  %v1866_v3 = vld [vmem:[#allocation2 + $0x51] sm:$0xff] }
  0xae   : > { %v366_v44 = vadd.f32 %v358_v36, %v338_v34  ;;  %v408_v45 = vmul.f32 %v1807_v28, %v394_v29  ;;  %v409_v46 = vmul.f32 %v1807_v28, %v1809_v30  ;;  %v428_v47 = vmul.f32 %v1811_v31, %v1809_v30  ;;  %v1862_v0 = vld [vmem:[#allocation2 + $0x67] sm:$0xff]  ;;  %v1864_v1 = vld [vmem:[#allocation2 + $0x7f] sm:$0xff]  ;;  %v1871_v7 = vld [vmem:[#allocation2 + $0x97] sm:$0xff] }
  0xaf   : > { %v367_v48 = vadd.f32 %v359_v41, %v339_v35  ;;  %v429_v49 = vmul.f32 %v1811_v31, %v1818_v37  ;;  %v1855_v59 = vmul.f32 %v1822_v40, %v1839_v53  ;;  %v448_v62 = vmul.f32 %v1837_v50, %v1818_v37  ;;  %v1884_v16 = vld [vmem:[#allocation2 + $0x68] sm:$0xff]  ;;  %v1890_v21 = vld [vmem:[#allocation2 + $0x80] sm:$0xff]  ;;  %v1235_v22 = vld [vmem:[%s1776_s27 + $0x30] sm:$0xff]  }
  0xb0   : > { %1078 = vmatpush3.bf16.msra.mxu0 %v1231_v13  ;;  %1107 = vmatpush3.bf16.msra.mxu1 %v1231_v13  ;;  %v386_v56 = vadd.f32 %v378_v42, %v366_v44  ;;  %v449_v63 = vmul.f32 %v1837_v50, %v1849_v57  ;;  %v478_v4 = vmul.f32 %v1843_v54, %v464_v51  ;;  %v1882_v13 = vld [vmem:[#allocation2 + $0xaf] sm:$0xff]  ;;  %v1897_v34 = vld [vmem:[#allocation2 + $0x98] sm:$0xff] }
  0xb1   : > { %1079 = vmatprep.subr.bf16.mxu0 %v1232_v19  ;;  %1100 = vmatprep.subr.bf16.mxu1 %v1232_v19  ;;  %v387_v61 = vadd.f32 %v379_v43, %v367_v48  ;;  %v479_v5 = vmul.f32 %v1843_v54, %v465_v52  ;;  %v498_v6 = vmul.f32 %v1851_v58, %v465_v52  ;;  %v1236_v51 = vld [vmem:[%s1776_s27 + $0x38] sm:$0xff]  }
  0xb2   : > { %v416_v2 = vadd.f32 %v408_v45, %v386_v56  ;;  %v499_v9 = vmul.f32 %v1851_v58, %v1839_v53  ;;  %v519_v10 = vmul.f32 %v1822_v40, %v1866_v3  ;;  %v1880_v11 = vrot.slane %v1847_v55, %v336_v14  ;;  %v1907_v45 = vld [vmem:[#allocation2 + $0x69] sm:$0xff] }
  0xb3   : > { %v417_v8 = vadd.f32 %v409_v46, %v387_v61  ;;  %v343_v20 = vmul.f32 %v1797_v25, %v1864_v1  ;;  %v362_v29 = vmul.f32 %v1801_v26, %v1864_v1  ;;  %v363_v32 = vmul.f32 %v1801_v26, %v1871_v7 }
  0xb4   : > { %1080 = vmatpush3.bf16.msra.mxu0 %v1232_v19  ;;  %1108 = vmatpush3.bf16.msra.mxu1 %v1232_v19  ;;  %v436_v17 = vadd.f32 %v428_v47, %v416_v2  ;;  %v342_v19 = vmul.f32 %v1797_v25, %v1862_v0  ;;  %v382_v36 = vmul.f32 %v1803_v27, %v1871_v7 }
  0xb5   : > { %1081 = vmatprep.subr.bf16.mxu0 %v1233_v39  ;;  %1101 = vmatprep.subr.bf16.mxu1 %v1233_v39  ;;  %v437_v14 = vadd.f32 %v429_v49, %v417_v8  ;;  %v383_v38 = vmul.f32 %v1803_v27, %v1882_v13  ;;  %v371_v43 = vadd.f32 %v363_v32, %v343_v20  ;;  %v1913_v49 = vld [vmem:[#allocation2 + $0x81] sm:$0xff] }
  0xb6   : > { %v456_v35 = vadd.f32 %v448_v62, %v436_v17  ;;  %v370_v42 = vadd.f32 %v362_v29, %v342_v19  ;;  %v413_v44 = vmul.f32 %v1807_v28, %v1890_v21  ;;  %v432_v47 = vmul.f32 %v1811_v31, %v1890_v21  ;;  %v1916_v62 = vld [vmem:[#allocation2 + $0xb0] sm:$0xff] }
  0xb7   : > { %v457_v41 = vadd.f32 %v449_v63, %v437_v14  ;;  %v433_v48 = vmul.f32 %v1811_v31, %v1897_v34  ;;  %v391_v61 = vadd.f32 %v383_v38, %v371_v43  ;;  %v1918_v63 = vld [vmem:[#allocation2 + $0x99] sm:$0xff]  ;;  %v452_v2 = vmul.f32 %v1837_v50, %v1897_v34 }
  0xb8   : > { %1082 = vmatpush3.bf16.msra.mxu0 %v1233_v39  ;;  %1109 = vmatpush3.bf16.msra.mxu1 %v1233_v39  ;;  %v412_v39 = vmul.f32 %v1807_v28, %v1884_v16  ;;  %v486_v46 = vadd.f32 %v478_v4, %v456_v35  ;;  %v390_v56 = vadd.f32 %v382_v36, %v370_v42  ;;  %v1933_v36 = vld [vmem:[#allocation2 + $0xb1] sm:$0xff] }
  0xb9   : > { %1083 = vmatprep.subr.bf16.mxu0 %v1234_v60  ;;  %1102 = vmatprep.subr.bf16.mxu1 %v1234_v60  ;;  %v487_v52 = vadd.f32 %v479_v5, %v457_v41  ;;  %v453_v4 = vmul.f32 %v1837_v50, %v1916_v62  ;;  %v482_v8 = vmul.f32 %v1843_v54, %v1907_v45 }
  0xba   : > { %v420_v19 = vadd.f32 %v412_v39, %v390_v56  ;;  %v421_v20 = vadd.f32 %v413_v44, %v391_v61  ;;  %v483_v5 = vmul.f32 %v1843_v54, %v1913_v49  ;;  %v503_v29 = vmul.f32 %v1851_v58, %v1918_v63 }
  0xbb   : > { %v507_v17 = vadd.f32 %v499_v9, %v487_v52  ;;  %v340_v39 = vmul.f32 %v1797_v25, %v1791_v23  ;;  %v341_v43 = vmul.f32 %v1797_v25, %v1793_v24  ;;  %v380_v56 = vmul.f32 %v1803_v27, %v1862_v0 }
  0xbc   : > { %1084 = vmatpush3.bf16.msra.mxu0 %v1234_v60  ;;  %1110 = vmatpush3.bf16.msra.mxu1 %v1234_v60  ;;  %v506_v60 = vadd.f32 %v498_v6, %v486_v46  ;;  %v502_v6 = vmul.f32 %v1851_v58, %v1913_v49  ;;  %v440_v35 = vadd.f32 %v432_v47, %v420_v19 }
  0xbd   : > { %1085 = vmatprep.subr.bf16.mxu0 %v1235_v22  ;;  %1103 = vmatprep.subr.bf16.mxu1 %v1235_v22  ;;  %v527_v32 = vadd.f32 %v519_v10, %v507_v17  ;;  %v441_v9 = vadd.f32 %v433_v48, %v421_v20  ;;  %v360_v46 = vmul.f32 %v1801_v26, %v1793_v24 }
  0xbe   : > { %v526_v14 = vadd.f32 %v1855_v59, %v506_v60  ;;  %v523_v59 = vmul.f32 %v1822_v40, %v1933_v36  ;;  %v460_v10 = vadd.f32 %v452_v2, %v440_v35  ;;  %v361_v47 = vmul.f32 %v1801_v26, %v1862_v0 }
  0xbf   : > { %v1945_v41 = vadd.f32 %v1880_v11, %v527_v32  ;;  %v461_v42 = vadd.f32 %v453_v4, %v441_v9  ;;  %v381_v2 = vmul.f32 %v1803_v27, %v1864_v1  ;;  %v410_v19 = vmul.f32 %v1807_v28, %v1818_v37 }
  0xc0   : > { %1086 = vmatpush3.bf16.msra.mxu0 %v1235_v22  ;;  %1111 = vmatpush3.bf16.msra.mxu1 %v1235_v22  ;;  %v1936_v38 = vadd.f32 %v1880_v11, %v526_v14  ;;  %v522_v22 = vmul.f32 %v1822_v40, %v1918_v63  ;;  %v490_v48 = vadd.f32 %v482_v8, %v460_v10 }
  0xc1   : > { %1087 = vmatprep.subr.bf16.mxu0 %v1236_v51  ;;  %1104 = vmatprep.subr.bf16.mxu1 %v1236_v51  ;;  %v547_v23 = vmul.f32 %v1945_v41, %v1945_v41  ;;  %v491_v52 = vadd.f32 %v483_v5, %v461_v42  ;;  %v369_v60 = vadd.f32 %v361_v47, %v341_v43 }
  0xc2   : > { %v546_v44 = vmul.f32 %v1936_v38, %v1936_v38  ;;  %v510_v4 = vadd.f32 %v502_v6, %v490_v48  ;;  %v411_v0 = vmul.f32 %v1807_v28, %v1849_v57  ;;  %v430_v9 = vmul.f32 %v1811_v31, %v1849_v57 }
  0xc3   : > { %v555_v24 = vmul.f32 %v547_v23, %v1945_v41  ;;  %v511_v17 = vadd.f32 %v503_v29, %v491_v52  ;;  %v389_v5 = vadd.f32 %v381_v2, %v369_v60  ;;  %v431_v29 = vmul.f32 %v1811_v31, %v1884_v16 }
  0xc4   : > { %1088 = vmatpush3.bf16.msra.mxu0 %v1236_v51  ;;  %1112 = vmatpush3.bf16.msra.mxu1 %v1236_v51  ;;  %v554_v61 = vmul.f32 %v546_v44, %v1936_v38  ;;  %v368_v51 = vadd.f32 %v360_v46, %v340_v39  ;;  %v530_v32 = vadd.f32 %v522_v22, %v510_v4 }
  0xc5   : > { %v563_v14 = vmul.f32 0.044715, %v555_v24  ;;  %v531_v35 = vadd.f32 %v523_v59, %v511_v17  ;;  %v419_v6 = vadd.f32 %v411_v0, %v389_v5  ;;  %v450_v22 = vmul.f32 %v1837_v50, %v1884_v16 }
  0xc6   : > { %v562_v20 = vmul.f32 0.044715, %v554_v61  ;;  %v388_v8 = vadd.f32 %v380_v56, %v368_v51  ;;  %v1974_v42 = vadd.f32 %v1880_v11, %v530_v32  ;;  %v451_v47 = vmul.f32 %v1837_v50, %v1890_v21  ;;  %v333_v32 = vld [vmem:[#allocation2 + $0xdf] sm:$0xff] }
  0xc7   : > { %v571_v10 = vadd.f32 %v563_v14, %v1945_v41  ;;  %v1977_v43 = vadd.f32 %v1880_v11, %v531_v35  ;;  %v439_v46 = vadd.f32 %v431_v29, %v419_v6  ;;  %v480_v56 = vmul.f32 %v1843_v54, %v1839_v53 }
  0xc8   : > { %v570_v1 = vadd.f32 %v562_v20, %v1936_v38  ;;  %v418_v39 = vadd.f32 %v410_v19, %v388_v8  ;;  %v550_v48 = vmul.f32 %v1974_v42, %v1974_v42  ;;  %v481_v60 = vmul.f32 %v1843_v54, %v1866_v3  ;;  %v332_v8 = vld [vmem:[#allocation2 + $0xc7] sm:$0xff] }
  0xc9   : > { %v579_v23 = vmul.f32 0.7978846, %v571_v10  ;;  %v551_v52 = vmul.f32 %v1977_v43, %v1977_v43  ;;  %v459_v51 = vadd.f32 %v451_v47, %v439_v46  ;;  %v500_v4 = vmul.f32 %v1851_v58, %v1866_v3 }
  0xca   : > { %v578_v59 = vmul.f32 0.7978846, %v570_v1  ;;  %v438_v44 = vadd.f32 %v430_v9, %v418_v39  ;;  %v558_v2 = vmul.f32 %v550_v48, %v1974_v42  ;;  %v501_v20 = vmul.f32 %v1851_v58, %v1907_v45 }
  0xcb   : > { %v559_v24 = vmul.f32 %v551_v52, %v1977_v43  ;;  %v489_v19 = vadd.f32 %v481_v60, %v459_v51  ;;  %v520_v53 = vmul.f32 %v1822_v40, %v1907_v45  ;;  %v521_v14 = vmul.f32 %v1822_v40, %v1913_v49  ;;  %v403_v52 = vld [vmem:[#allocation2 + $0xe0] sm:$0xff] }
  0xcc   : > { %1237 = vtanh.f32 %v578_v59  ;;  %v458_v61 = vadd.f32 %v450_v22, %v438_v44  ;;  %v566_v5 = vmul.f32 0.044715, %v558_v2  ;;  %v344_v35 = vmul.f32 %v1797_v25, %v1871_v7  ;;  %v2012_v44 = vld [vmem:[#allocation2 + $0xc8] sm:$0xff] }
  0xcd   : > { %1239 = vtanh.f32 %v579_v23  ;;  %v567_v0 = vmul.f32 0.044715, %v559_v24  ;;  %v509_v3 = vadd.f32 %v501_v20, %v489_v19  ;;  %v345_v1 = vmul.f32 %v1797_v25, %v1882_v13 }
  0xce   : > { %v488_v17 = vadd.f32 %v480_v56, %v458_v61  ;;  %v364_v39 = vmul.f32 %v1801_v26, %v1882_v13  ;;  %v574_v45 = vadd.f32 %v566_v5, %v1974_v42  ;;  %v365_v29 = vmul.f32 %v1801_v26, %v332_v8 }
  0xcf   : > { %v575_v6 = vadd.f32 %v567_v0, %v1977_v43  ;;  %v384_v49 = vmul.f32 %v1803_v27, %v332_v8  ;;  %v529_v22 = vadd.f32 %v521_v14, %v509_v3  ;;  %v385_v7 = vmul.f32 %v1803_v27, %v333_v32  ;;  %v472_v14 = vld [vmem:[#allocation2 + $0xc9] sm:$0xff] }
  0xd0   : > { %v508_v9 = vadd.f32 %v500_v4, %v488_v17  ;;  %v372_v59 = vadd.f32 %v364_v39, %v344_v35  ;;  %v582_v46 = vmul.f32 0.7978846, %v574_v45  ;;  %v373_v47 = vadd.f32 %v365_v29, %v345_v1 }
  0xd1   : > { %v583_v25 = vmul.f32 0.7978846, %v575_v6  ;;  %v414_v13 = vmul.f32 %v1807_v28, %v1897_v34  ;;  %v2020_v26 = vadd.f32 %v1880_v11, %v529_v22  ;;  %v415_v56 = vmul.f32 %v1807_v28, %v1916_v62 }
  0xd2   : > { %v528_v10 = vadd.f32 %v520_v53, %v508_v9  ;;  %v392_v48 = vadd.f32 %v384_v49, %v372_v59  ;;  %1241 = vtanh.f32 %v582_v46  ;;  %v393_v27 = vadd.f32 %v385_v7, %v373_v47 }
  0xd3   : > { %v434_v61 = vmul.f32 %v1811_v31, %v1916_v62  ;;  %v435_v51 = vmul.f32 %v1811_v31, %v2012_v44  ;;  %1243 = vtanh.f32 %v583_v25  ;;  %v549_v24 = vmul.f32 %v2020_v26, %v2020_v26 }
  0xd4   : > { %v2017_v23 = vadd.f32 %v1880_v11, %v528_v10  ;;  %v422_v4 = vadd.f32 %v414_v13, %v392_v48  ;;  %v423_v28 = vadd.f32 %v415_v56, %v393_v27  ;;  %v454_v20 = vmul.f32 %v1837_v50, %v2012_v44 }
  0xd5   : > { %v455_v53 = vmul.f32 %v1837_v50, %v403_v52  ;;  %v557_v5 = vmul.f32 %v549_v24, %v2020_v26  ;;  %v484_v9 = vmul.f32 %v1843_v54, %v1918_v63  ;;  %v485_v3 = vmul.f32 %v1843_v54, %v1933_v36  ;;  %v473_v50 = vld [vmem:[#allocation2 + $0xe1] sm:$0xff] }
  0xd6   : > { %v1238_v60 = vpop.eup %1237  ;;  %v548_v2 = vmul.f32 %v2017_v23, %v2017_v23  ;;  %v442_v0 = vadd.f32 %v434_v61, %v422_v4  ;;  %v443_v35 = vadd.f32 %v435_v51, %v423_v28  ;;  %v504_v10 = vmul.f32 %v1851_v58, %v1933_v36 }
  0xd7   : > { %v1240_v17 = vpop.eup %1239  ;;  %v594_v19 = vadd.f32 1.0, %v1238_v60  ;;  %v565_v45 = vmul.f32 0.044715, %v557_v5  ;;  %v505_v22 = vmul.f32 %v1851_v58, %v472_v14  ;;  %v524_v25 = vmul.f32 %v1822_v40, %v472_v14 }
  0xd8   : > { %v595_v8 = vadd.f32 1.0, %v1240_v17  ;;  %v556_v31 = vmul.f32 %v548_v2, %v2017_v23  ;;  %v462_v6 = vadd.f32 %v454_v20, %v442_v0  ;;  %v463_v49 = vadd.f32 %v455_v53, %v443_v35 }
  0xd9   : > { %v602_v32 = vmul.f32 0.5, %v594_v19  ;;  %v573_v7 = vadd.f32 %v565_v45, %v2020_v26  ;;  %v525_v47 = vmul.f32 %v1822_v40, %v473_v50 }
  0xda   : > { %v603_v1 = vmul.f32 0.5, %v595_v8  ;;  %v564_v39 = vmul.f32 0.044715, %v556_v31  ;;  %v492_v54 = vadd.f32 %v484_v9, %v462_v6  ;;  %v493_v46 = vadd.f32 %v485_v3, %v463_v49 }
  0xdb   : > { %v610_v29 = vmul.f32 %v602_v32, %v1936_v38  ;;  %v581_v48 = vmul.f32 0.7978846, %v573_v7 }
  0xdc   : > { %v611_v59 = vmul.f32 %v603_v1, %v1945_v41  ;;  %v572_v63 = vadd.f32 %v564_v39, %v2017_v23  ;;  %v512_v52 = vadd.f32 %v504_v10, %v492_v54  ;;  %v1242_v56 = vpop.eup %1241  ;;  %v513_v36 = vadd.f32 %v505_v22, %v493_v46 }
  0xdd   : > { %v1244_v27 = vpop.eup %1243  ;;  %v598_v58 = vadd.f32 1.0, %v1242_v56  ;;  %v643_v46 = vrot.slane %v1847_v55, %v406_v18 }
  0xde   : > { %v618_v13 = vpack.c.bf16 %v611_v59, %v610_v29  ;;  %v580_v38 = vmul.f32 0.7978846, %v572_v63  ;;  %v532_v41 = vadd.f32 %v524_v25, %v512_v52  ;;  %v599_v61 = vadd.f32 1.0, %v1244_v27 }
  0xdf   : > { %v533_v51 = vadd.f32 %v525_v47, %v513_v36  ;;  %v606_v60 = vmul.f32 0.5, %v598_v58 }
  0xe0   : > { %1089 = vmatprep.mubr.bf16.mxu0 %v618_v13  ;;  %1245 = vtanh.f32 %v580_v38  ;;  %v544_v2 = vadd.f32 %v1880_v11, %v532_v41  ;;  %v607_v24 = vmul.f32 0.5, %v599_v61 }
  0xe1   : > { %1247 = vtanh.f32 %v581_v48  ;;  %v545_v40 = vadd.f32 %v1880_v11, %v533_v51  ;;  %v614_v4 = vmul.f32 %v606_v60, %v1974_v42 }
  0xe2   : > { %v552_v17 = vmul.f32 %v544_v2, %v544_v2  ;;  %v615_v19 = vmul.f32 %v607_v24, %v1977_v43 }
  0xe3   : > { %v553_v28 = vmul.f32 %v545_v40, %v545_v40 }
  0xe4   : > { %v560_v20 = vmul.f32 %v552_v17, %v544_v2  ;;  %v620_v53 = vpack.c.bf16 %v615_v19, %v614_v4 }
  0xe5   : > { %v561_v8 = vmul.f32 %v553_v28, %v545_v40 }
  0xe6   : > { %v568_v31 = vmul.f32 0.044715, %v560_v20  ;;  %1093 = vmatprep.mubr.bf16.mxu1 %v620_v53 }
  0xe7   : > { %v569_v5 = vmul.f32 0.044715, %v561_v8 }
  0xe8   : > { %v576_v14 = vadd.f32 %v568_v31, %v544_v2 }
  0xe9   : > { %v577_v9 = vadd.f32 %v569_v5, %v545_v40 }
  0xea   : > { %v1246_v0 = vpop.eup %1245  ;;  %v584_v1 = vmul.f32 0.7978846, %v576_v14 }
  0xeb   : > { %v1248_v32 = vpop.eup %1247  ;;  %v596_v35 = vadd.f32 1.0, %v1246_v0  ;;  %v585_v39 = vmul.f32 0.7978846, %v577_v9 }
  0xec   : > { %v597_v3 = vadd.f32 1.0, %v1248_v32  ;;  %1249 = vtanh.f32 %v584_v1 }
  0xed   : > { %v604_v11 = vmul.f32 0.5, %v596_v35  ;;  %1251 = vtanh.f32 %v585_v39 }
  0xee   : > { %v605_v42 = vmul.f32 0.5, %v597_v3 }
  0xef   : > { %v612_v43 = vmul.f32 %v604_v11, %v2017_v23 }
  0xf0   : > { %v613_v45 = vmul.f32 %v605_v42, %v2020_v26 }
  0xf2   : > { %v619_v6 = vpack.c.bf16 %v613_v45, %v612_v43 }
  0xf4   : > { %1090 = vmatmul.mubr.bf16.vlgmr.msra.gmra.mrb[0].mxu0 %v619_v6 }
  0xf6   : > { %v1250_v50 = vpop.eup %1249 }
  0xf7   : > { %v1252_v29 = vpop.eup %1251  ;;  %v600_v49 = vadd.f32 1.0, %v1250_v50 }
  0xf8   : > { %v601_v10 = vadd.f32 1.0, %v1252_v29 }
  0xf9   : > { %v608_v22 = vmul.f32 0.5, %v600_v49 }
  0xfa   : > { %v609_v59 = vmul.f32 0.5, %v601_v10 }
  0xfb   : > { %v616_v63 = vmul.f32 %v608_v22, %v544_v2 }
  0xfc   : > { %v617_v7 = vmul.f32 %v609_v59, %v545_v40 }
  0xfe   : > { %v621_v54 = vpack.c.bf16 %v617_v7, %v616_v63 }
 0x100   : > { %1094 = vmatmul.mubr.bf16.vlgmr.msra.gmra.mrb[0].mxu1 %v621_v54 }
 0x1c7   : > { %v1091_v23 = vpop.f32.mrb[0].mxu0 }
 0x1c8   : > { %v2059_v25 = vadd.f32 %v1091_v23, %v643_v46  ;;  %v726_v26 = vpop.f32.mrb[1].mxu0 }
 0x1c9   : > { %v2061_v47 = vadd.f32 %v726_v26, %v643_v46  ;;  %v1092_v13 = vpop.f32.mrb[2].mxu0 }
 0x1ca   : > { %v759_v38 = vmul.f32 %v2059_v25, %v2059_v25  ;;  %v2065_v48 = vadd.f32 %v1092_v13, %v643_v46  ;;  %v729_v52 = vpop.f32.mrb[3].mxu0 }
 0x1cb   : > { %v757_v56 = vmul.f32 %v2061_v47, %v2061_v47  ;;  %v2069_v36 = vadd.f32 %v729_v52, %v643_v46 }
 0x1cc   : > { %v767_v18 = vmul.f32 %v759_v38, %v2059_v25  ;;  %v760_v27 = vmul.f32 %v2065_v48, %v2065_v48  ;;  %v2113_v38 = vrot.slane %v1847_v55, %v356_v15 }
 0x1cd   : > { %v765_v58 = vmul.f32 %v757_v56, %v2061_v47  ;;  %v758_v41 = vmul.f32 %v2069_v36, %v2069_v36 }
 0x1ce   : > { %v775_v61 = vmul.f32 0.044715, %v767_v18  ;;  %v768_v51 = vmul.f32 %v760_v27, %v2065_v48 }
 0x1cf   : > { %v773_v60 = vmul.f32 0.044715, %v765_v58  ;;  %v766_v2 = vmul.f32 %v758_v41, %v2069_v36 }
 0x1d0   : > { %v783_v24 = vadd.f32 %v775_v61, %v2059_v25  ;;  %v776_v40 = vmul.f32 0.044715, %v768_v51 }
 0x1d1   : > { %v781_v4 = vadd.f32 %v773_v60, %v2061_v47  ;;  %v774_v17 = vmul.f32 0.044715, %v766_v2 }
 0x1d2   : > { %v791_v19 = vmul.f32 0.7978846, %v783_v24  ;;  %v784_v28 = vadd.f32 %v776_v40, %v2065_v48 }
 0x1d3   : > { %v789_v20 = vmul.f32 0.7978846, %v781_v4  ;;  %v782_v53 = vadd.f32 %v774_v17, %v2069_v36  ;;  %v1095_v31 = vpop.f32.mrb[0].mxu1 }
 0x1d4   : > { %1253 = vtanh.f32 %v791_v19  ;;  %v792_v8 = vmul.f32 0.7978846, %v784_v28  ;;  %v2083_v0 = vadd.f32 %v1095_v31, %v643_v46  ;;  %v742_v14 = vpop.f32.mrb[1].mxu1 }
 0x1d5   : > { %1255 = vtanh.f32 %v789_v20  ;;  %v790_v5 = vmul.f32 0.7978846, %v782_v53  ;;  %v2085_v32 = vadd.f32 %v742_v14, %v643_v46  ;;  %v1096_v35 = vpop.f32.mrb[2].mxu1 }
 0x1d6   : > { %1257 = vtanh.f32 %v792_v8  ;;  %v763_v9 = vmul.f32 %v2083_v0, %v2083_v0  ;;  %v2089_v3 = vadd.f32 %v1096_v35, %v643_v46  ;;  %v745_v1 = vpop.f32.mrb[3].mxu1 }
 0x1d7   : > { %1259 = vtanh.f32 %v790_v5  ;;  %v761_v11 = vmul.f32 %v2085_v32, %v2085_v32  ;;  %v2093_v39 = vadd.f32 %v745_v1, %v643_v46  ;;  %v2107_v46 = vrot.slane %v1847_v55, %v476_v33 }
 0x1d8   : > { %v771_v42 = vmul.f32 %v763_v9, %v2083_v0  ;;  %v764_v43 = vmul.f32 %v2089_v3, %v2089_v3 }
 0x1d9   : > { %v769_v45 = vmul.f32 %v761_v11, %v2085_v32  ;;  %v762_v6 = vmul.f32 %v2093_v39, %v2093_v39 }
 0x1da   : > { %v779_v50 = vmul.f32 0.044715, %v771_v42  ;;  %v772_v29 = vmul.f32 %v764_v43, %v2089_v3 }
 0x1db   : > { %v777_v49 = vmul.f32 0.044715, %v769_v45  ;;  %v770_v10 = vmul.f32 %v762_v6, %v2093_v39 }
 0x1dc   : > { %v787_v59 = vadd.f32 %v779_v50, %v2083_v0  ;;  %v780_v63 = vmul.f32 0.044715, %v772_v29 }
 0x1dd   : > { %v785_v23 = vadd.f32 %v777_v49, %v2085_v32  ;;  %v778_v26 = vmul.f32 0.044715, %v770_v10 }
 0x1de   : > { %v1254_v22 = vpop.eup %1253  ;;  %v795_v52 = vmul.f32 0.7978846, %v787_v59  ;;  %v788_v18 = vadd.f32 %v780_v63, %v2089_v3 }
 0x1df   : > { %v1256_v7 = vpop.eup %1255  ;;  %v807_v54 = vadd.f32 1.0, %v1254_v22  ;;  %v793_v41 = vmul.f32 0.7978846, %v785_v23  ;;  %v786_v33 = vadd.f32 %v778_v26, %v2093_v39 }
 0x1e0   : > { %v1258_v13 = vpop.eup %1257  ;;  %v805_v56 = vadd.f32 1.0, %v1256_v7  ;;  %1261 = vtanh.f32 %v795_v52  ;;  %v796_v60 = vmul.f32 0.7978846, %v788_v18 }
 0x1e1   : > { %v1260_v27 = vpop.eup %1259  ;;  %v815_v58 = vmul.f32 0.5, %v807_v54  ;;  %v808_v61 = vadd.f32 1.0, %v1258_v13  ;;  %1263 = vtanh.f32 %v793_v41  ;;  %v794_v15 = vmul.f32 0.7978846, %v786_v33 }
 0x1e2   : > { %v813_v51 = vmul.f32 0.5, %v805_v56  ;;  %v806_v2 = vadd.f32 1.0, %v1260_v27  ;;  %1265 = vtanh.f32 %v796_v60 }
 0x1e3   : > { %v823_v24 = vmul.f32 %v815_v58, %v2059_v25  ;;  %v816_v12 = vmul.f32 0.5, %v808_v61  ;;  %1267 = vtanh.f32 %v794_v15 }
 0x1e4   : > { %v821_v55 = vmul.f32 %v813_v51, %v2061_v47  ;;  %v814_v40 = vmul.f32 0.5, %v806_v2 }
 0x1e5   : > { %v835_v4 = vmul.f32 %v2107_v46, %v823_v24  ;;  %v824_v17 = vmul.f32 %v816_v12, %v2065_v48 }
 0x1e6   : > { %v833_v19 = vmul.f32 %v2107_v46, %v821_v55  ;;  %v822_v28 = vmul.f32 %v814_v40, %v2069_v36 }
 0x1e7   : > { %v847_v20 = vadd.f32 %v2113_v38, %v835_v4  ;;  %v836_v25 = vmul.f32 %v2107_v46, %v824_v17 }
 0x1e8   : > { %v845_v53 = vadd.f32 %v2113_v38, %v833_v19  ;;  %v834_v8 = vmul.f32 %v2107_v46, %v822_v28 }
 0x1e9   : > { %v864_v47 = vadd.f32 %v847_v20, %v1849_v57  ;;  %v848_v31 = vadd.f32 %v2113_v38, %v836_v25 }
 0x1ea   : > { %v862_v5 = vadd.f32 %v845_v53, %v1809_v30  ;;  %v846_v48 = vadd.f32 %v2113_v38, %v834_v8  ;;  %v1262_v36 = vpop.eup %1261 }
 0x1eb   : > { %872 = vst [vmem:[#allocation2 + $0x50] sm:$0xff] %v864_v47  ;;  %v865_v14 = vadd.f32 %v848_v31, %v1884_v16  ;;  %v1264_v9 = vpop.eup %1263  ;;  %v811_v1 = vadd.f32 1.0, %v1262_v36  ;;  %884 = vst [vmem:[%s1764_s29 + $0x10] sm:$0xff] (!%p1052_p8), %v864_v47 }
 0x1ec   : > { %870 = vst [vmem:[#allocation2 + $0x20] sm:$0xff] %v862_v5  ;;  %v863_v35 = vadd.f32 %v846_v48, %v1818_v37  ;;  %v1266_v11 = vpop.eup %1265  ;;  %v809_v42 = vadd.f32 1.0, %v1264_v9  ;;  %882 = vst [vmem:[%s1764_s29] sm:$0xff] (!%p1052_p8), %v862_v5 }
 0x1ed   : > { %873 = vst [vmem:[#allocation2 + $0x68] sm:$0xff] %v865_v14  ;;  %v1268_v57 = vpop.eup %1267  ;;  %v819_v43 = vmul.f32 0.5, %v811_v1  ;;  %v812_v45 = vadd.f32 1.0, %v1266_v11  ;;  %885 = vst [vmem:[%s1764_s29 + $0x18] sm:$0xff] (!%p1052_p8), %v865_v14 }
 0x1ee   : > { %871 = vst [vmem:[#allocation2 + $0x38] sm:$0xff] %v863_v35  ;;  %v817_v6 = vmul.f32 0.5, %v809_v42  ;;  %v810_v30 = vadd.f32 1.0, %v1268_v57  ;;  %883 = vst [vmem:[%s1764_s29 + $0x8] sm:$0xff] (!%p1052_p8), %v863_v35 }
 0x1ef   : > { %v827_v50 = vmul.f32 %v819_v43, %v2083_v0  ;;  %v820_v29 = vmul.f32 0.5, %v812_v45 }
 0x1f0   : > { %v825_v16 = vmul.f32 %v817_v6, %v2085_v32  ;;  %v818_v49 = vmul.f32 0.5, %v810_v30 }
 0x1f1   : > { %v839_v10 = vmul.f32 %v2107_v46, %v827_v50  ;;  %v828_v37 = vmul.f32 %v820_v29, %v2089_v3 }
 0x1f2   : > { %v837_v22 = vmul.f32 %v2107_v46, %v825_v16  ;;  %v826_v59 = vmul.f32 %v818_v49, %v2093_v39 }
 0x1f3   : > { %v851_v63 = vadd.f32 %v2113_v38, %v839_v10  ;;  %v840_v7 = vmul.f32 %v2107_v46, %v828_v37 }
 0x1f4   : > { %v849_v54 = vadd.f32 %v2113_v38, %v837_v22  ;;  %v838_v0 = vmul.f32 %v2107_v46, %v826_v59  ;;  %881 = sbr.rel (%p1052_p8) target bundleno = 507 (0x1fb), region = 60 }
 0x1f5   : > { %v868_v23 = vadd.f32 %v851_v63, %v1916_v62  ;;  %v852_v32 = vadd.f32 %v2113_v38, %v840_v7 }
 0x1f6   : > { %v866_v26 = vadd.f32 %v849_v54, %v1890_v21  ;;  %v850_v3 = vadd.f32 %v2113_v38, %v838_v0 }
 0x1f7   : > { %876 = vst [vmem:[#allocation2 + $0xb0] sm:$0xff] %v868_v23  ;;  %v869_v13 = vadd.f32 %v852_v32, %v2012_v44  ;;  %888 = vst [vmem:[%s1764_s29 + $0x30] sm:$0xff] (!%p1052_p8), %v868_v23 }
 0x1f8   : > { %874 = vst [vmem:[#allocation2 + $0x80] sm:$0xff] %v866_v26  ;;  %v867_v39 = vadd.f32 %v850_v3, %v1897_v34  ;;  %886 = vst [vmem:[%s1764_s29 + $0x20] sm:$0xff] (!%p1052_p8), %v866_v26 }
 0x1f9   : > { %877 = vst [vmem:[#allocation2 + $0xc8] sm:$0xff] %v869_v13  ;;  %889 = vst [vmem:[%s1764_s29 + $0x38] sm:$0xff] (!%p1052_p8), %v869_v13 }
 0x1fa   : > { %875 = vst [vmem:[#allocation2 + $0x98] sm:$0xff] %v867_v39  ;;  %887 = vst [vmem:[%s1764_s29 + $0x28] sm:$0xff] (!%p1052_p8), %v867_v39 }
 0x1fb PF: > { %s1060_s18 = sshll.u32 %s1477_s19, 10  ;;  %s904_s28 = sshll.u32 %s1764_s29, 4  ;;  %s2165_s28 = int_to_ptr.vmem [resolvable:$true] %s904_s28 }
 0x1fc   : > { %s2162_s6 = scalar_lea.hbm %s2223_s4, %s1060_s18  ;;  %s891_s15 = scalar_lea.sflag [#allocation5], %s1746_s11 }
 0x1fd   : > { %s1383_s12 = scalar_lea.vmem %s2165_s28, 1024  ;;  %s1500_s13 = smov [#allocation11]  }
 0x1fe   : > { %p1384_p10 = scmp.ne.s32.totalorder %s2165_s28, %s1383_s12  ;;  %s1387_s10 = sshll.u32 %s1500_s13, 4  ;;  %s1388_s10 = int_to_ptr.vmem [resolvable:$false] %s1387_s10 }
 0x1ff   : > { %s1389_s19 = scalar_lea.vmem %s1388_s10, 2048  ;;  %p1390_p3 = scmp.lt.s32.totalorder %s2165_s28, %s1388_s10 }
 0x200   : > { %p1385_p11 = pnand %p1384_p10, %p1685_p6  ;;  %p1391_p7 = scmp.lt.s32.totalorder %s1389_s19, %s1383_s12 }
 0x202   : > { %p1386_p13 = pneg %p1385_p11  ;;  %p1392_p12 = por %p1391_p7, %p1390_p3 }
 0x204   : > { %p1393_p1 = pnand %p1392_p12, %p1386_p13 }
 0x206   : > { %1396 = shalt.err (!%p1393_p1)
}
 0x207   : > { %s1397_s29 = scalar_lea.hbm %s2162_s6, 1024  ;;  %s1401_s26 = scalar_lea.hbm %s2223_s4, 2048 }
 0x208   : > { %p1398_p2 = scmp.ne.s32.totalorder %s2162_s6, %s1397_s29  ;;  %p1402_p0 = scmp.lt.u32.totalorder %s2162_s6, %s2223_s4 }
 0x209   : > { %p1403_p4 = scmp.lt.u32.totalorder %s1401_s26, %s1397_s29  ;;  %p1405_p10 = scmp.lt.u32.totalorder %s1397_s29, %s2162_s6 }
 0x20a   : > { %p1399_p5 = pnand %p1398_p2, %p1685_p6 }
 0x20b   : > { %p1404_p8 = por %p1403_p4, %p1402_p0 }
 0x20c   : > { %p1400_p9 = pneg %p1399_p5 }
 0x20d   : > { %p1406_p11 = por %p1405_p10, %p1404_p8 }
 0x20f   : > { %p1407_p13 = pnand %p1406_p11, %p1400_p9 }
 0x211   : > { %1410 = shalt.err (!%p1407_p13)
}
 0x212   : > { %s1501_s7 = smov 128   ;;  %s1502_s18 = smov 8  }
 0x213   : > { %1127 = dma.vmem_to_hbm [thread:$0]  (%p1685_p6), %s2165_s28, 1024, %s2162_s6, %s891_s15, %s1501_s7, %s1501_s7, %s1502_s18  }
 0x214 PF: > { %s2251_s23 = sld [smem:[#allocation16_spill]]  ;;  %s2252_s24 = sld [smem:[#allocation17_spill]] }
 0x215   : > { %p1154_p3 = scmp.ge.s32.totalorder %s1489_s22, 2 }
 0x21a   : > { %s919_s12 = sand.u32 1, %s2251_s23   ;;  %p2253_p7 = scmp.ne.s32.totalorder %s2252_s24, 0 }
 0x21b   : > { %s920_s13 = scalar_lea.sflag [#allocation5], %s919_s12 }
 0x21c   : > { %p1144_p12 = pnand %p1154_p3, %p2253_p7 }
 0x21e   : > { %1456 = dma.done.wait (!%p1144_p12), %s920_s13, 1024  }
 0x21f   : > { %1458 = vsyncadd (!%p1144_p12), %s920_s13, 4294966272  ;;  %s22_s22 = sadd.s32 1, %s1489_s22   ;;  %s2254_s15 = smov %s1465_s16 }
 0x220   : > { %p19_p1 = scmp.ge.s32.totalorder %s22_s22, 8   ;;  %s2255_s16 = smov %s1469_s17 }
 0x221   : > { %s2256_s17 = smov %s1702_s5  ;;  %s2257_s18 = smov %s1481_s20 }
 0x222   : > { %s2258_s19 = smov %s1485_s21  ;;  %s2259_s20 = smov %s2262_s1 }
 0x223   : > { %s2260_s21 = smov %s2266_s14  ;;  %21 = sbr.rel (!%p19_p1) target bundleno = 11 (0xb), region = 107 }
 0x22a   :  { %925 = vsyncpa [#allocation4], 1 }
 0x22b   :  { %927 = vsyncpa [#allocation4 + $0x1], 1 }
 0x22c   :  { %928 = vsyncpa [#allocation7], 1 }
 0x22d   :  { %929 = vsyncpa [#allocation10], 1 }
 0x22e   :  { %930 = vsyncpa [#allocation5], 1 }
 0x22f   :  { %932 = vsyncpa [#allocation5 + $0x1], 1 }

</bundles_post_ra>
